<compile_context>
chip_gen: v7x
topology: tpu7x:2x2x1
jax: 0.10.0
libtpu: 0.0.40
codegen_flags: <defaults>
</compile_context>

<pallas_src>
import functools
import math

import jax
import jax.numpy as jnp
from jax import lax
from jax.experimental import pallas as pl
from jax.experimental.pallas import tpu as pltpu


def _layernorm(h, w_row, b_row, eps):
    # one-pass stats (sum & sum of squares); matches unbiased=False LayerNorm
    d = h.shape[-1]
    inv_d = jnp.float32(1.0 / d)
    mean = jnp.sum(h, axis=-1, keepdims=True) * inv_d
    meansq = jnp.sum(h * h, axis=-1, keepdims=True) * inv_d
    var = meansq - mean * mean
    return (h - mean) * lax.rsqrt(var + eps) * w_row + b_row


def _gelu_exact(x):
    # PyTorch nn.GELU default (exact, erf-based)
    return 0.5 * x * (1.0 + lax.erf(x * jnp.float32(1.0 / math.sqrt(2.0))))


def encoder_block_kernel(
    x_ref,
    ln1w_ref, ln1b_ref,
    wqkv_ref, bqkv_ref,
    wo_ref, bo_ref,
    ln2w_ref, ln2b_ref,
    w1_ref, b1_ref,
    w2_ref, b2_ref,
    o_ref,
    qkv_ref, acc_ref,
    *, seq, heads, head_dim, batches_per_tile, m_tile, eps, approx_softmax,
):
    D = heads * head_dim
    M = w1_ref.shape[1]
    wdt = wqkv_ref.dtype            # MXU-operand dtype (f32 or bf16)
    rows = batches_per_tile * seq
    eps = jnp.float32(eps)

    x = x_ref[...]                  # (rows, D) f32 activations for this tile

    # ---- norm1 ----
    n1 = _layernorm(x, ln1w_ref[0], ln1b_ref[0], eps)

    # ---- fused QKV projection (1/sqrt(head_dim) folded into Wq / bq) ----
    qkv_ref[...] = (
        jnp.dot(n1.astype(wdt), wqkv_ref[...],
                preferred_element_type=jnp.float32) + bqkv_ref[0]
    ).astype(qkv_ref.dtype)

    # ---- self attention; output projection accumulated per head so the
    #      only stores are lane-dense (S, D) slabs (no 64-lane masked stores).
    def attn_batch(b):
        r0 = b * seq
        if not isinstance(b, int) and seq % 8 == 0:
            r0 = pl.multiple_of(r0, 8)
        attn_b = jnp.zeros((seq, D), jnp.float32)
        for h in range(heads):      # static lane offsets, tiny trip count
            c0 = h * head_dim
            qh = qkv_ref[pl.ds(r0, seq), c0:c0 + head_dim]
            kh = qkv_ref[pl.ds(r0, seq), D + c0:D + c0 + head_dim]
            vh = qkv_ref[pl.ds(r0, seq), 2 * D + c0:2 * D + c0 + head_dim]
            s = lax.dot_general(qh, kh, (((1,), (1,)), ((), ())),
                                preferred_element_type=jnp.float32)   # (S, S)
            m = jnp.max(s, axis=-1, keepdims=True)
            e = jnp.exp(s - m)
            p = e * pl.reciprocal(jnp.sum(e, axis=-1, keepdims=True),
                                  approx=approx_softmax)
            ctx_h = jnp.dot(p.astype(wdt), vh,
                            preferred_element_type=jnp.float32)       # (S, hd)
            attn_b = attn_b + jnp.dot(ctx_h.astype(wdt),
                                      wo_ref[c0:c0 + head_dim, :],
                                      preferred_element_type=jnp.float32)
        acc_ref[pl.ds(r0, seq), :] = attn_b      # lane-dense store

    if batches_per_tile <= 4:
        for b in range(batches_per_tile):        # small static unroll
            attn_batch(b)
    else:
        def body(b, carry):                       # bounded live ranges
            attn_batch(b)
            return carry
        lax.fori_loop(0, batches_per_tile, body, 0)

    # TODO(synk): dropout layers are identity (eval mode); no RNG drop applied.
    out1 = acc_ref[...] + bo_ref[0] + x          # residual 1

    # ---- norm2 + M-tiled MLP (hdn never fully materializes) ----
    n2 = _layernorm(out1, ln2w_ref[0], ln2b_ref[0], eps)
    n2c = n2.astype(wdt)
    mlp = jnp.zeros((rows, D), jnp.float32)
    for m0 in range(0, M, m_tile):
        m1 = min(M, m0 + m_tile)
        hdn = jnp.dot(n2c, w1_ref[:, m0:m1],
                      preferred_element_type=jnp.float32) + b1_ref[0, m0:m1]
        hdn = _gelu_exact(hdn)                   # f32 VPU/EUP math
        mlp = mlp + jnp.dot(hdn.astype(wdt), w2_ref[m0:m1, :],
                            preferred_element_type=jnp.float32)

    o_ref[...] = (mlp + b2_ref[0] + out1).astype(o_ref.dtype)   # residual 2


def _pick_batches_per_tile(B, S, target_rows=512):
    """Largest divisor of B whose row tile is <= target and sublane-aligned."""
    best = B                     # single tile: always layout-legal fallback
    for d in range(1, B + 1):
        if B % d:
            continue
        rows = d * S
        if rows > target_rows:
            break
        if rows % 8 == 0 or d == B:
            best = d
    return best


def _vmem_cap_bytes():
    try:
        info = pltpu.get_tpu_info()
        cap = getattr(info, "vmem_capacity_bytes", None)
        if cap:
            return int(cap) * 3 // 4            # ~96 MiB v5e/v6e, ~48 MiB v7x
    except Exception:
        pass
    return 48 * 1024 * 1024                     # safe on every generation


def encoder_block(x, params, *, heads, eps=1e-5, compute_dtype=jnp.float32,
                  approx_softmax=True):
    B, S, D = x.shape
    head_dim = D // heads
    M = params["w1"].shape[1]
    BS = B * S

    batches_per_tile = _pick_batches_per_tile(B, S)
    num_tiles = B // batches_per_tile
    rows_tile = batches_per_tile * S
    m_tile = M if M <= 2048 else 2048

    inv_scale = jnp.float32(1.0 / math.sqrt(head_dim))
    # Fuse Q/K/V weights into one (D, 3D) matrix; fold 1/sqrt(head_dim) into
    # the Q columns (and bq). Biases stay f32 (added after f32 accumulation).
    wqkv = jnp.concatenate(
        [params["wq"] * inv_scale, params["wk"], params["wv"]],
        axis=1).astype(compute_dtype)
    bqkv = jnp.concatenate(
        [params["bq"] * inv_scale, params["bk"], params["bv"]],
        axis=1).astype(jnp.float32)
    wo = params["wo"].astype(compute_dtype)
    w1 = params["w1"].astype(compute_dtype)
    w2 = params["w2"].astype(compute_dtype)

    x2d = x.reshape(BS, D)     # flatten batch into rows (layout-preserving)

    args = (
        params["ln1_w"], params["ln1_b"],
        wqkv, bqkv,
        wo, params["bo"],
        params["ln2_w"], params["ln2_b"],
        w1, params["b1"],
        w2, params["b2"],
    )

    def const_spec(shape):
        nd = len(shape)
        return pl.BlockSpec(shape, lambda i, _nd=nd: (0,) * _nd)

    in_specs = [pl.BlockSpec((rows_tile, D), lambda i: (i, 0))]
    in_specs += [const_spec(a.shape) for a in args]
    out_specs = pl.BlockSpec((rows_tile, D), lambda i: (i, 0))

    kernel = functools.partial(
        encoder_block_kernel,
        seq=S, heads=heads, head_dim=head_dim,
        batches_per_tile=batches_per_tile, m_tile=m_tile,
        eps=eps, approx_softmax=approx_softmax,
    )

    # Advisory cost estimate for the XLA scheduler.
    flops = (2 * BS * D * 3 * D                    # fused QKV projection
             + 4 * B * heads * S * S * head_dim    # scores + context
             + 2 * BS * D * D                      # output projection
             + 4 * BS * D * M)                     # MLP fc1 + fc2
    transcendentals = B * heads * S * S + BS * M + 2 * BS
    param_bytes = int(sum(a.size * a.dtype.itemsize for a in args))
    bytes_accessed = 2 * BS * D * 4 + param_bytes
    cost = pl.CostEstimate(flops=int(flops),
                           transcendentals=int(transcendentals),
                           bytes_accessed=int(bytes_accessed))

    # VMEM budget: activation tiles (double-buffered), resident weights,
    # qkv / attention-accumulator scratch, MLP hidden tile, live temporaries.
    wbytes = jnp.dtype(compute_dtype).itemsize
    act_bytes = rows_tile * D * 4
    vmem_needed = (
        2 * 2 * act_bytes                  # x + out tiles, double-buffered
        + 2 * param_bytes                  # resident weights + headroom
        + rows_tile * 3 * D * wbytes       # qkv scratch
        + act_bytes                        # attention accumulator scratch
        + 2 * rows_tile * m_tile * 4       # hdn tile + gelu temporary
        + 6 * act_bytes                    # n1 / n2 / out1 / mlp live values
        + (4 << 20)                        # fixed headroom
    )
    vmem_limit = int(min(max(vmem_needed, 8 << 20), _vmem_cap_bytes()))

    out2d = pl.pallas_call(
        kernel,
        out_shape=jax.ShapeDtypeStruct((BS, D), x.dtype),
        grid_spec=pltpu.PrefetchScalarGridSpec(
            num_scalar_prefetch=0,
            grid=(num_tiles,),
            in_specs=in_specs,
            out_specs=out_specs,
            scratch_shapes=[
                pltpu.VMEM((rows_tile, 3 * D), compute_dtype),  # qkv
                pltpu.VMEM((rows_tile, D), jnp.float32),        # attn accum
            ],
        ),
        compiler_params=pltpu.CompilerParams(
            dimension_semantics=("parallel",),      # v7x: shard tiles over TCs
            vmem_limit_bytes=vmem_limit,
        ),
        cost_estimate=cost,
    )(x2d, *args)

    return out2d.reshape(B, S, D)


def _reference(x, params, *, heads, eps=1e-5):
    # pure-JAX reference replicating the PyTorch forward (dropout = identity)
    def ln(h, w, b):
        mean = jnp.mean(h, axis=-1, keepdims=True)
        var = jnp.mean((h - mean) ** 2, axis=-1, keepdims=True)
        return (h - mean) / jnp.sqrt(var + eps) * w[0] + b[0]

    B, S, D = x.shape
    hd = D // heads
    n1 = ln(x, params["ln1_w"], params["ln1_b"])
    q = (n1 @ params["wq"] + params["bq"][0]).reshape(B, S, heads, hd)
    k = (n1 @ params["wk"] + params["bk"][0]).reshape(B, S, heads, hd)
    v = (n1 @ params["wv"] + params["bv"][0]).reshape(B, S, heads, hd)
    q = q.transpose(0, 2, 1, 3); k = k.transpose(0, 2, 1, 3); v = v.transpose(0, 2, 1, 3)
    aw = jnp.einsum("bhqd,bhkd->bhqk", q, k) / (hd ** 0.5)
    aw = jax.nn.softmax(aw, axis=-1)
    ctx = jnp.einsum("bhqk,bhkd->bhqd", aw, v).transpose(0, 2, 1, 3).reshape(B, S, D)
    attn = ctx @ params["wo"] + params["bo"][0]
    out1 = attn + x
    n2 = ln(out1, params["ln2_w"], params["ln2_b"])
    h = n2 @ params["w1"] + params["b1"][0]
    h = 0.5 * h * (1.0 + lax.erf(h / jnp.sqrt(2.0)))
    mlp = h @ params["w2"] + params["b2"][0]
    return mlp + out1


def make_params(key, D, M, heads):
    hd = D // heads
    ks = jax.random.split(key, 8)
    s = 0.05  # keep activations well-conditioned
    return {
        "ln1_w": jnp.ones((1, D), jnp.float32),
        "ln1_b": jnp.zeros((1, D), jnp.float32),
        "wq": s * jax.random.normal(ks[0], (D, heads * hd), jnp.float32),
        "bq": jnp.zeros((1, heads * hd), jnp.float32),
        "wk": s * jax.random.normal(ks[1], (D, heads * hd), jnp.float32),
        "bk": jnp.zeros((1, heads * hd), jnp.float32),
        "wv": s * jax.random.normal(ks[2], (D, heads * hd), jnp.float32),
        "bv": jnp.zeros((1, heads * hd), jnp.float32),
        "wo": s * jax.random.normal(ks[3], (heads * hd, D), jnp.float32),
        "bo": jnp.zeros((1, D), jnp.float32),
        "ln2_w": jnp.ones((1, D), jnp.float32),
        "ln2_b": jnp.zeros((1, D), jnp.float32),
        "w1": s * jax.random.normal(ks[4], (D, M), jnp.float32),
        "b1": 0.01 * jax.random.normal(ks[5], (1, M), jnp.float32),
        "w2": s * jax.random.normal(ks[6], (M, D), jnp.float32),
        "b2": 0.01 * jax.random.normal(ks[7], (1, D), jnp.float32),
    }


if __name__ == "__main__":
    B, S, D, M, H = 2, 8, 32, 64, 4  # batch, seq, in_dim, mlp_dim, num_heads
    key = jax.random.PRNGKey(0)
    kx, kp = jax.random.split(key)
    x = jax.random.normal(kx, (B, S, D), jnp.float32)
    params = make_params(kp, D, M, H)

    out = encoder_block(x, params, heads=H)        # f32 MXU operands
    out = jax.block_until_ready(out)

    ref = _reference(x, params, heads=H)
    assert out.shape == (B, S, D)
    # approx softmax reciprocal (EUP vrcp) + fused-scale / one-pass LN give a
    # slightly different rounding path -> modest tolerance.
    assert jnp.allclose(out, ref, atol=2e-3, rtol=2e-3), "mismatch vs reference"
    print("KERNEL_OK")
</pallas_src>

<mosaic_0001>
module attributes {stable_mosaic.version = 11 : i64} {
  func.func @encoder_block_kernel(%arg0: i32, %arg1: memref<16x32xf32, #tpu.memory_space<vmem>>, %arg2: memref<1x32xf32, #tpu.memory_space<vmem>>, %arg3: memref<1x32xf32, #tpu.memory_space<vmem>>, %arg4: memref<32x96xf32, #tpu.memory_space<vmem>>, %arg5: memref<1x96xf32, #tpu.memory_space<vmem>>, %arg6: memref<32x32xf32, #tpu.memory_space<vmem>>, %arg7: memref<1x32xf32, #tpu.memory_space<vmem>>, %arg8: memref<1x32xf32, #tpu.memory_space<vmem>>, %arg9: memref<1x32xf32, #tpu.memory_space<vmem>>, %arg10: memref<32x64xf32, #tpu.memory_space<vmem>>, %arg11: memref<1x64xf32, #tpu.memory_space<vmem>>, %arg12: memref<64x32xf32, #tpu.memory_space<vmem>>, %arg13: memref<1x32xf32, #tpu.memory_space<vmem>>, %arg14: memref<16x32xf32, #tpu.memory_space<vmem>>, %arg15: memref<16x96xf32, #tpu.memory_space<vmem>>, %arg16: memref<16x32xf32, #tpu.memory_space<vmem>>) attributes {dimension_semantics = [#tpu.dimension_semantics<parallel>], iteration_bounds = array<i64: 1>, scalar_prefetch = 0 : i64, scratch_operands = 2 : i64, tpu.core_type = #tpu.core_type<tc>, window_params = [{transform_indices = @transform_0, window_bounds = array<i64: 16, 32>}, {pipeline_mode = #tpu.pipeline_mode<synchronous>, transform_indices = @transform_1, window_bounds = array<i64: 1, 32>}, {pipeline_mode = #tpu.pipeline_mode<synchronous>, transform_indices = @transform_2, window_bounds = array<i64: 1, 32>}, {pipeline_mode = #tpu.pipeline_mode<synchronous>, transform_indices = @transform_3, window_bounds = array<i64: 32, 96>}, {pipeline_mode = #tpu.pipeline_mode<synchronous>, transform_indices = @transform_4, window_bounds = array<i64: 1, 96>}, {pipeline_mode = #tpu.pipeline_mode<synchronous>, transform_indices = @transform_5, window_bounds = array<i64: 32, 32>}, {pipeline_mode = #tpu.pipeline_mode<synchronous>, transform_indices = @transform_6, window_bounds = array<i64: 1, 32>}, {pipeline_mode = #tpu.pipeline_mode<synchronous>, transform_indices = @transform_7, window_bounds = array<i64: 1, 32>}, {pipeline_mode = #tpu.pipeline_mode<synchronous>, transform_indices = @transform_8, window_bounds = array<i64: 1, 32>}, {pipeline_mode = #tpu.pipeline_mode<synchronous>, transform_indices = @transform_9, window_bounds = array<i64: 32, 64>}, {pipeline_mode = #tpu.pipeline_mode<synchronous>, transform_indices = @transform_10, window_bounds = array<i64: 1, 64>}, {pipeline_mode = #tpu.pipeline_mode<synchronous>, transform_indices = @transform_11, window_bounds = array<i64: 64, 32>}, {pipeline_mode = #tpu.pipeline_mode<synchronous>, transform_indices = @transform_12, window_bounds = array<i64: 1, 32>}, {transform_indices = @transform_13, window_bounds = array<i64: 16, 32>}]} {
    %c0 = arith.constant 0 : index
    %c0_0 = arith.constant 0 : index
    %0 = vector.load %arg1[%c0, %c0_0] : memref<16x32xf32, #tpu.memory_space<vmem>>, vector<16x32xf32>
    %c0_1 = arith.constant 0 : index
    %c0_2 = arith.constant 0 : index
    %1 = vector.load %arg2[%c0_1, %c0_2] : memref<1x32xf32, #tpu.memory_space<vmem>>, vector<1x32xf32>
    %2 = vector.shape_cast %1 : vector<1x32xf32> to vector<32xf32>
    %c0_3 = arith.constant 0 : index
    %c0_4 = arith.constant 0 : index
    %3 = vector.load %arg3[%c0_3, %c0_4] : memref<1x32xf32, #tpu.memory_space<vmem>>, vector<1x32xf32>
    %4 = vector.shape_cast %3 : vector<1x32xf32> to vector<32xf32>
    %cst = arith.constant dense<0.000000e+00> : vector<16xf32>
    %5 = vector.multi_reduction <add>, %0, %cst [1] : vector<16x32xf32> to vector<16xf32>
    %6 = vector.shape_cast %5 : vector<16xf32> to vector<16x1xf32>
    %cst_5 = arith.constant 3.125000e-02 : f32
    %7 = vector.broadcast %cst_5 : f32 to vector<16x1xf32>
    %8 = arith.mulf %6, %7 : vector<16x1xf32>
    %9 = arith.mulf %0, %0 : vector<16x32xf32>
    %cst_6 = arith.constant dense<0.000000e+00> : vector<16xf32>
    %10 = vector.multi_reduction <add>, %9, %cst_6 [1] : vector<16x32xf32> to vector<16xf32>
    %11 = vector.shape_cast %10 : vector<16xf32> to vector<16x1xf32>
    %cst_7 = arith.constant 3.125000e-02 : f32
    %12 = vector.broadcast %cst_7 : f32 to vector<16x1xf32>
    %13 = arith.mulf %11, %12 : vector<16x1xf32>
    %14 = arith.mulf %8, %8 : vector<16x1xf32>
    %15 = arith.subf %13, %14 : vector<16x1xf32>
    %16 = vector.broadcast %8 : vector<16x1xf32> to vector<16x32xf32>
    %17 = arith.subf %0, %16 : vector<16x32xf32>
    %cst_8 = arith.constant 9.99999974E-6 : f32
    %18 = vector.broadcast %cst_8 : f32 to vector<16x1xf32>
    %19 = arith.addf %15, %18 : vector<16x1xf32>
    %20 = math.rsqrt %19 : vector<16x1xf32>
    %21 = vector.broadcast %20 : vector<16x1xf32> to vector<16x32xf32>
    %22 = arith.mulf %17, %21 : vector<16x32xf32>
    %23 = vector.shape_cast %2 : vector<32xf32> to vector<1x32xf32>
    %24 = vector.broadcast %23 : vector<1x32xf32> to vector<16x32xf32>
    %25 = arith.mulf %22, %24 : vector<16x32xf32>
    %26 = vector.shape_cast %4 : vector<32xf32> to vector<1x32xf32>
    %27 = vector.broadcast %26 : vector<1x32xf32> to vector<16x32xf32>
    %28 = arith.addf %25, %27 : vector<16x32xf32>
    %c0_9 = arith.constant 0 : index
    %c0_10 = arith.constant 0 : index
    %29 = vector.load %arg4[%c0_9, %c0_10] : memref<32x96xf32, #tpu.memory_space<vmem>>, vector<32x96xf32>
    %cst_11 = arith.constant dense<0.000000e+00> : vector<16x96xf32>
    %30 = tpu.matmul %28, %29, %cst_11 {dimension_numbers = #tpu.dot_dimension_numbers<[1], [0], [0], [1], [0, 0, 1, 1], [], []>} : vector<16x32xf32>, vector<32x96xf32>, vector<16x96xf32> -> vector<16x96xf32>
    %c0_12 = arith.constant 0 : index
    %c0_13 = arith.constant 0 : index
    %31 = vector.load %arg5[%c0_12, %c0_13] : memref<1x96xf32, #tpu.memory_space<vmem>>, vector<1x96xf32>
    %32 = vector.shape_cast %31 : vector<1x96xf32> to vector<96xf32>
    %33 = vector.shape_cast %32 : vector<96xf32> to vector<1x96xf32>
    %34 = vector.broadcast %33 : vector<1x96xf32> to vector<16x96xf32>
    %35 = arith.addf %30, %34 : vector<16x96xf32>
    %c0_14 = arith.constant 0 : index
    %c0_15 = arith.constant 0 : index
    %36 = vector.load %arg15[%c0_14, %c0_15] : memref<16x96xf32, #tpu.memory_space<vmem>>, vector<16x96xf32>
    tpu.vector_store %arg15[%c0_14, %c0_15], %35 {strides = array<i32>} : memref<16x96xf32, #tpu.memory_space<vmem>>, vector<16x96xf32>,
    %cst_16 = arith.constant 0.000000e+00 : f32
    %37 = vector.broadcast %cst_16 : f32 to vector<8x32xf32>
    %c0_17 = arith.constant 0 : index
    %c0_18 = arith.constant 0 : index
    %38 = vector.load %arg15[%c0_17, %c0_18] : memref<16x96xf32, #tpu.memory_space<vmem>>, vector<8x8xf32>
    %c0_19 = arith.constant 0 : index
    %c32 = arith.constant 32 : index
    %39 = vector.load %arg15[%c0_19, %c32] : memref<16x96xf32, #tpu.memory_space<vmem>>, vector<8x8xf32>
    %c0_20 = arith.constant 0 : index
    %c64 = arith.constant 64 : index
    %40 = vector.load %arg15[%c0_20, %c64] : memref<16x96xf32, #tpu.memory_space<vmem>>, vector<8x8xf32>
    %cst_21 = arith.constant dense<0.000000e+00> : vector<8x8xf32>
    %41 = tpu.matmul %38, %39, %cst_21 {dimension_numbers = #tpu.dot_dimension_numbers<[1], [1], [0], [0], [0, 0, 1, 0], [], []>} : vector<8x8xf32>, vector<8x8xf32>, vector<8x8xf32> -> vector<8x8xf32>
    %cst_22 = arith.constant dense<0xFF800000> : vector<8xf32>
    %42 = vector.multi_reduction <maximumf>, %41, %cst_22 [1] : vector<8x8xf32> to vector<8xf32>
    %43 = vector.shape_cast %42 : vector<8xf32> to vector<8x1xf32>
    %44 = vector.broadcast %43 : vector<8x1xf32> to vector<8x8xf32>
    %45 = arith.subf %41, %44 : vector<8x8xf32>
    %46 = math.exp %45 : vector<8x8xf32>
    %cst_23 = arith.constant dense<0.000000e+00> : vector<8xf32>
    %47 = vector.multi_reduction <add>, %46, %cst_23 [1] : vector<8x8xf32> to vector<8xf32>
    %48 = vector.shape_cast %47 : vector<8xf32> to vector<8x1xf32>
    %49 = tpu.reciprocal %48 {approx = true} : vector<8x1xf32> -> vector<8x1xf32>
    %50 = vector.broadcast %49 : vector<8x1xf32> to vector<8x8xf32>
    %51 = arith.mulf %46, %50 : vector<8x8xf32>
    %cst_24 = arith.constant dense<0.000000e+00> : vector<8x8xf32>
    %52 = tpu.matmul %51, %40, %cst_24 {dimension_numbers = #tpu.dot_dimension_numbers<[1], [0], [0], [1], [0, 0, 1, 1], [], []>} : vector<8x8xf32>, vector<8x8xf32>, vector<8x8xf32> -> vector<8x8xf32>
    %c0_25 = arith.constant 0 : index
    %c0_26 = arith.constant 0 : index
    %53 = vector.load %arg6[%c0_25, %c0_26] : memref<32x32xf32, #tpu.memory_space<vmem>>, vector<8x32xf32>
    %cst_27 = arith.constant dense<0.000000e+00> : vector<8x32xf32>
    %54 = tpu.matmul %52, %53, %cst_27 {dimension_numbers = #tpu.dot_dimension_numbers<[1], [0], [0], [1], [0, 0, 1, 1], [], []>} : vector<8x8xf32>, vector<8x32xf32>, vector<8x32xf32> -> vector<8x32xf32>
    %55 = arith.addf %37, %54 : vector<8x32xf32>
    %c0_28 = arith.constant 0 : index
    %c8 = arith.constant 8 : index
    %56 = vector.load %arg15[%c0_28, %c8] : memref<16x96xf32, #tpu.memory_space<vmem>>, vector<8x8xf32>
    %c0_29 = arith.constant 0 : index
    %c40 = arith.constant 40 : index
    %57 = vector.load %arg15[%c0_29, %c40] : memref<16x96xf32, #tpu.memory_space<vmem>>, vector<8x8xf32>
    %c0_30 = arith.constant 0 : index
    %c72 = arith.constant 72 : index
    %58 = vector.load %arg15[%c0_30, %c72] : memref<16x96xf32, #tpu.memory_space<vmem>>, vector<8x8xf32>
    %cst_31 = arith.constant dense<0.000000e+00> : vector<8x8xf32>
    %59 = tpu.matmul %56, %57, %cst_31 {dimension_numbers = #tpu.dot_dimension_numbers<[1], [1], [0], [0], [0, 0, 1, 0], [], []>} : vector<8x8xf32>, vector<8x8xf32>, vector<8x8xf32> -> vector<8x8xf32>
    %cst_32 = arith.constant dense<0xFF800000> : vector<8xf32>
    %60 = vector.multi_reduction <maximumf>, %59, %cst_32 [1] : vector<8x8xf32> to vector<8xf32>
    %61 = vector.shape_cast %60 : vector<8xf32> to vector<8x1xf32>
    %62 = vector.broadcast %61 : vector<8x1xf32> to vector<8x8xf32>
    %63 = arith.subf %59, %62 : vector<8x8xf32>
    %64 = math.exp %63 : vector<8x8xf32>
    %cst_33 = arith.constant dense<0.000000e+00> : vector<8xf32>
    %65 = vector.multi_reduction <add>, %64, %cst_33 [1] : vector<8x8xf32> to vector<8xf32>
    %66 = vector.shape_cast %65 : vector<8xf32> to vector<8x1xf32>
    %67 = tpu.reciprocal %66 {approx = true} : vector<8x1xf32> -> vector<8x1xf32>
    %68 = vector.broadcast %67 : vector<8x1xf32> to vector<8x8xf32>
    %69 = arith.mulf %64, %68 : vector<8x8xf32>
    %cst_34 = arith.constant dense<0.000000e+00> : vector<8x8xf32>
    %70 = tpu.matmul %69, %58, %cst_34 {dimension_numbers = #tpu.dot_dimension_numbers<[1], [0], [0], [1], [0, 0, 1, 1], [], []>} : vector<8x8xf32>, vector<8x8xf32>, vector<8x8xf32> -> vector<8x8xf32>
    %c8_35 = arith.constant 8 : index
    %c0_36 = arith.constant 0 : index
    %71 = vector.load %arg6[%c8_35, %c0_36] : memref<32x32xf32, #tpu.memory_space<vmem>>, vector<8x32xf32>
    %cst_37 = arith.constant dense<0.000000e+00> : vector<8x32xf32>
    %72 = tpu.matmul %70, %71, %cst_37 {dimension_numbers = #tpu.dot_dimension_numbers<[1], [0], [0], [1], [0, 0, 1, 1], [], []>} : vector<8x8xf32>, vector<8x32xf32>, vector<8x32xf32> -> vector<8x32xf32>
    %73 = arith.addf %55, %72 : vector<8x32xf32>
    %c0_38 = arith.constant 0 : index
    %c16 = arith.constant 16 : index
    %74 = vector.load %arg15[%c0_38, %c16] : memref<16x96xf32, #tpu.memory_space<vmem>>, vector<8x8xf32>
    %c0_39 = arith.constant 0 : index
    %c48 = arith.constant 48 : index
    %75 = vector.load %arg15[%c0_39, %c48] : memref<16x96xf32, #tpu.memory_space<vmem>>, vector<8x8xf32>
    %c0_40 = arith.constant 0 : index
    %c80 = arith.constant 80 : index
    %76 = vector.load %arg15[%c0_40, %c80] : memref<16x96xf32, #tpu.memory_space<vmem>>, vector<8x8xf32>
    %cst_41 = arith.constant dense<0.000000e+00> : vector<8x8xf32>
    %77 = tpu.matmul %74, %75, %cst_41 {dimension_numbers = #tpu.dot_dimension_numbers<[1], [1], [0], [0], [0, 0, 1, 0], [], []>} : vector<8x8xf32>, vector<8x8xf32>, vector<8x8xf32> -> vector<8x8xf32>
    %cst_42 = arith.constant dense<0xFF800000> : vector<8xf32>
    %78 = vector.multi_reduction <maximumf>, %77, %cst_42 [1] : vector<8x8xf32> to vector<8xf32>
    %79 = vector.shape_cast %78 : vector<8xf32> to vector<8x1xf32>
    %80 = vector.broadcast %79 : vector<8x1xf32> to vector<8x8xf32>
    %81 = arith.subf %77, %80 : vector<8x8xf32>
    %82 = math.exp %81 : vector<8x8xf32>
    %cst_43 = arith.constant dense<0.000000e+00> : vector<8xf32>
    %83 = vector.multi_reduction <add>, %82, %cst_43 [1] : vector<8x8xf32> to vector<8xf32>
    %84 = vector.shape_cast %83 : vector<8xf32> to vector<8x1xf32>
    %85 = tpu.reciprocal %84 {approx = true} : vector<8x1xf32> -> vector<8x1xf32>
    %86 = vector.broadcast %85 : vector<8x1xf32> to vector<8x8xf32>
    %87 = arith.mulf %82, %86 : vector<8x8xf32>
    %cst_44 = arith.constant dense<0.000000e+00> : vector<8x8xf32>
    %88 = tpu.matmul %87, %76, %cst_44 {dimension_numbers = #tpu.dot_dimension_numbers<[1], [0], [0], [1], [0, 0, 1, 1], [], []>} : vector<8x8xf32>, vector<8x8xf32>, vector<8x8xf32> -> vector<8x8xf32>
    %c16_45 = arith.constant 16 : index
    %c0_46 = arith.constant 0 : index
    %89 = vector.load %arg6[%c16_45, %c0_46] : memref<32x32xf32, #tpu.memory_space<vmem>>, vector<8x32xf32>
    %cst_47 = arith.constant dense<0.000000e+00> : vector<8x32xf32>
    %90 = tpu.matmul %88, %89, %cst_47 {dimension_numbers = #tpu.dot_dimension_numbers<[1], [0], [0], [1], [0, 0, 1, 1], [], []>} : vector<8x8xf32>, vector<8x32xf32>, vector<8x32xf32> -> vector<8x32xf32>
    %91 = arith.addf %73, %90 : vector<8x32xf32>
    %c0_48 = arith.constant 0 : index
    %c24 = arith.constant 24 : index
    %92 = vector.load %arg15[%c0_48, %c24] : memref<16x96xf32, #tpu.memory_space<vmem>>, vector<8x8xf32>
    %c0_49 = arith.constant 0 : index
    %c56 = arith.constant 56 : index
    %93 = vector.load %arg15[%c0_49, %c56] : memref<16x96xf32, #tpu.memory_space<vmem>>, vector<8x8xf32>
    %c0_50 = arith.constant 0 : index
    %c88 = arith.constant 88 : index
    %94 = vector.load %arg15[%c0_50, %c88] : memref<16x96xf32, #tpu.memory_space<vmem>>, vector<8x8xf32>
    %cst_51 = arith.constant dense<0.000000e+00> : vector<8x8xf32>
    %95 = tpu.matmul %92, %93, %cst_51 {dimension_numbers = #tpu.dot_dimension_numbers<[1], [1], [0], [0], [0, 0, 1, 0], [], []>} : vector<8x8xf32>, vector<8x8xf32>, vector<8x8xf32> -> vector<8x8xf32>
    %cst_52 = arith.constant dense<0xFF800000> : vector<8xf32>
    %96 = vector.multi_reduction <maximumf>, %95, %cst_52 [1] : vector<8x8xf32> to vector<8xf32>
    %97 = vector.shape_cast %96 : vector<8xf32> to vector<8x1xf32>
    %98 = vector.broadcast %97 : vector<8x1xf32> to vector<8x8xf32>
    %99 = arith.subf %95, %98 : vector<8x8xf32>
    %100 = math.exp %99 : vector<8x8xf32>
    %cst_53 = arith.constant dense<0.000000e+00> : vector<8xf32>
    %101 = vector.multi_reduction <add>, %100, %cst_53 [1] : vector<8x8xf32> to vector<8xf32>
    %102 = vector.shape_cast %101 : vector<8xf32> to vector<8x1xf32>
    %103 = tpu.reciprocal %102 {approx = true} : vector<8x1xf32> -> vector<8x1xf32>
    %104 = vector.broadcast %103 : vector<8x1xf32> to vector<8x8xf32>
    %105 = arith.mulf %100, %104 : vector<8x8xf32>
    %cst_54 = arith.constant dense<0.000000e+00> : vector<8x8xf32>
    %106 = tpu.matmul %105, %94, %cst_54 {dimension_numbers = #tpu.dot_dimension_numbers<[1], [0], [0], [1], [0, 0, 1, 1], [], []>} : vector<8x8xf32>, vector<8x8xf32>, vector<8x8xf32> -> vector<8x8xf32>
    %c24_55 = arith.constant 24 : index
    %c0_56 = arith.constant 0 : index
    %107 = vector.load %arg6[%c24_55, %c0_56] : memref<32x32xf32, #tpu.memory_space<vmem>>, vector<8x32xf32>
    %cst_57 = arith.constant dense<0.000000e+00> : vector<8x32xf32>
    %108 = tpu.matmul %106, %107, %cst_57 {dimension_numbers = #tpu.dot_dimension_numbers<[1], [0], [0], [1], [0, 0, 1, 1], [], []>} : vector<8x8xf32>, vector<8x32xf32>, vector<8x32xf32> -> vector<8x32xf32>
    %109 = arith.addf %91, %108 : vector<8x32xf32>
    %c0_58 = arith.constant 0 : index
    %c0_59 = arith.constant 0 : index
    %110 = vector.load %arg16[%c0_58, %c0_59] : memref<16x32xf32, #tpu.memory_space<vmem>>, vector<8x32xf32>
    tpu.vector_store %arg16[%c0_58, %c0_59], %109 {strides = array<i32>} : memref<16x32xf32, #tpu.memory_space<vmem>>, vector<8x32xf32>,
    %cst_60 = arith.constant 0.000000e+00 : f32
    %111 = vector.broadcast %cst_60 : f32 to vector<8x32xf32>
    %c8_61 = arith.constant 8 : index
    %c0_62 = arith.constant 0 : index
    %112 = vector.load %arg15[%c8_61, %c0_62] : memref<16x96xf32, #tpu.memory_space<vmem>>, vector<8x8xf32>
    %c8_63 = arith.constant 8 : index
    %c32_64 = arith.constant 32 : index
    %113 = vector.load %arg15[%c8_63, %c32_64] : memref<16x96xf32, #tpu.memory_space<vmem>>, vector<8x8xf32>
    %c8_65 = arith.constant 8 : index
    %c64_66 = arith.constant 64 : index
    %114 = vector.load %arg15[%c8_65, %c64_66] : memref<16x96xf32, #tpu.memory_space<vmem>>, vector<8x8xf32>
    %cst_67 = arith.constant dense<0.000000e+00> : vector<8x8xf32>
    %115 = tpu.matmul %112, %113, %cst_67 {dimension_numbers = #tpu.dot_dimension_numbers<[1], [1], [0], [0], [0, 0, 1, 0], [], []>} : vector<8x8xf32>, vector<8x8xf32>, vector<8x8xf32> -> vector<8x8xf32>
    %cst_68 = arith.constant dense<0xFF800000> : vector<8xf32>
    %116 = vector.multi_reduction <maximumf>, %115, %cst_68 [1] : vector<8x8xf32> to vector<8xf32>
    %117 = vector.shape_cast %116 : vector<8xf32> to vector<8x1xf32>
    %118 = vector.broadcast %117 : vector<8x1xf32> to vector<8x8xf32>
    %119 = arith.subf %115, %118 : vector<8x8xf32>
    %120 = math.exp %119 : vector<8x8xf32>
    %cst_69 = arith.constant dense<0.000000e+00> : vector<8xf32>
    %121 = vector.multi_reduction <add>, %120, %cst_69 [1] : vector<8x8xf32> to vector<8xf32>
    %122 = vector.shape_cast %121 : vector<8xf32> to vector<8x1xf32>
    %123 = tpu.reciprocal %122 {approx = true} : vector<8x1xf32> -> vector<8x1xf32>
    %124 = vector.broadcast %123 : vector<8x1xf32> to vector<8x8xf32>
    %125 = arith.mulf %120, %124 : vector<8x8xf32>
    %cst_70 = arith.constant dense<0.000000e+00> : vector<8x8xf32>
    %126 = tpu.matmul %125, %114, %cst_70 {dimension_numbers = #tpu.dot_dimension_numbers<[1], [0], [0], [1], [0, 0, 1, 1], [], []>} : vector<8x8xf32>, vector<8x8xf32>, vector<8x8xf32> -> vector<8x8xf32>
    %c0_71 = arith.constant 0 : index
    %c0_72 = arith.constant 0 : index
    %127 = vector.load %arg6[%c0_71, %c0_72] : memref<32x32xf32, #tpu.memory_space<vmem>>, vector<8x32xf32>
    %cst_73 = arith.constant dense<0.000000e+00> : vector<8x32xf32>
    %128 = tpu.matmul %126, %127, %cst_73 {dimension_numbers = #tpu.dot_dimension_numbers<[1], [0], [0], [1], [0, 0, 1, 1], [], []>} : vector<8x8xf32>, vector<8x32xf32>, vector<8x32xf32> -> vector<8x32xf32>
    %129 = arith.addf %111, %128 : vector<8x32xf32>
    %c8_74 = arith.constant 8 : index
    %c8_75 = arith.constant 8 : index
    %130 = vector.load %arg15[%c8_74, %c8_75] : memref<16x96xf32, #tpu.memory_space<vmem>>, vector<8x8xf32>
    %c8_76 = arith.constant 8 : index
    %c40_77 = arith.constant 40 : index
    %131 = vector.load %arg15[%c8_76, %c40_77] : memref<16x96xf32, #tpu.memory_space<vmem>>, vector<8x8xf32>
    %c8_78 = arith.constant 8 : index
    %c72_79 = arith.constant 72 : index
    %132 = vector.load %arg15[%c8_78, %c72_79] : memref<16x96xf32, #tpu.memory_space<vmem>>, vector<8x8xf32>
    %cst_80 = arith.constant dense<0.000000e+00> : vector<8x8xf32>
    %133 = tpu.matmul %130, %131, %cst_80 {dimension_numbers = #tpu.dot_dimension_numbers<[1], [1], [0], [0], [0, 0, 1, 0], [], []>} : vector<8x8xf32>, vector<8x8xf32>, vector<8x8xf32> -> vector<8x8xf32>
    %cst_81 = arith.constant dense<0xFF800000> : vector<8xf32>
    %134 = vector.multi_reduction <maximumf>, %133, %cst_81 [1] : vector<8x8xf32> to vector<8xf32>
    %135 = vector.shape_cast %134 : vector<8xf32> to vector<8x1xf32>
    %136 = vector.broadcast %135 : vector<8x1xf32> to vector<8x8xf32>
    %137 = arith.subf %133, %136 : vector<8x8xf32>
    %138 = math.exp %137 : vector<8x8xf32>
    %cst_82 = arith.constant dense<0.000000e+00> : vector<8xf32>
    %139 = vector.multi_reduction <add>, %138, %cst_82 [1] : vector<8x8xf32> to vector<8xf32>
    %140 = vector.shape_cast %139 : vector<8xf32> to vector<8x1xf32>
    %141 = tpu.reciprocal %140 {approx = true} : vector<8x1xf32> -> vector<8x1xf32>
    %142 = vector.broadcast %141 : vector<8x1xf32> to vector<8x8xf32>
    %143 = arith.mulf %138, %142 : vector<8x8xf32>
    %cst_83 = arith.constant dense<0.000000e+00> : vector<8x8xf32>
    %144 = tpu.matmul %143, %132, %cst_83 {dimension_numbers = #tpu.dot_dimension_numbers<[1], [0], [0], [1], [0, 0, 1, 1], [], []>} : vector<8x8xf32>, vector<8x8xf32>, vector<8x8xf32> -> vector<8x8xf32>
    %c8_84 = arith.constant 8 : index
    %c0_85 = arith.constant 0 : index
    %145 = vector.load %arg6[%c8_84, %c0_85] : memref<32x32xf32, #tpu.memory_space<vmem>>, vector<8x32xf32>
    %cst_86 = arith.constant dense<0.000000e+00> : vector<8x32xf32>
    %146 = tpu.matmul %144, %145, %cst_86 {dimension_numbers = #tpu.dot_dimension_numbers<[1], [0], [0], [1], [0, 0, 1, 1], [], []>} : vector<8x8xf32>, vector<8x32xf32>, vector<8x32xf32> -> vector<8x32xf32>
    %147 = arith.addf %129, %146 : vector<8x32xf32>
    %c8_87 = arith.constant 8 : index
    %c16_88 = arith.constant 16 : index
    %148 = vector.load %arg15[%c8_87, %c16_88] : memref<16x96xf32, #tpu.memory_space<vmem>>, vector<8x8xf32>
    %c8_89 = arith.constant 8 : index
    %c48_90 = arith.constant 48 : index
    %149 = vector.load %arg15[%c8_89, %c48_90] : memref<16x96xf32, #tpu.memory_space<vmem>>, vector<8x8xf32>
    %c8_91 = arith.constant 8 : index
    %c80_92 = arith.constant 80 : index
    %150 = vector.load %arg15[%c8_91, %c80_92] : memref<16x96xf32, #tpu.memory_space<vmem>>, vector<8x8xf32>
    %cst_93 = arith.constant dense<0.000000e+00> : vector<8x8xf32>
    %151 = tpu.matmul %148, %149, %cst_93 {dimension_numbers = #tpu.dot_dimension_numbers<[1], [1], [0], [0], [0, 0, 1, 0], [], []>} : vector<8x8xf32>, vector<8x8xf32>, vector<8x8xf32> -> vector<8x8xf32>
    %cst_94 = arith.constant dense<0xFF800000> : vector<8xf32>
    %152 = vector.multi_reduction <maximumf>, %151, %cst_94 [1] : vector<8x8xf32> to vector<8xf32>
    %153 = vector.shape_cast %152 : vector<8xf32> to vector<8x1xf32>
    %154 = vector.broadcast %153 : vector<8x1xf32> to vector<8x8xf32>
    %155 = arith.subf %151, %154 : vector<8x8xf32>
    %156 = math.exp %155 : vector<8x8xf32>
    %cst_95 = arith.constant dense<0.000000e+00> : vector<8xf32>
    %157 = vector.multi_reduction <add>, %156, %cst_95 [1] : vector<8x8xf32> to vector<8xf32>
    %158 = vector.shape_cast %157 : vector<8xf32> to vector<8x1xf32>
    %159 = tpu.reciprocal %158 {approx = true} : vector<8x1xf32> -> vector<8x1xf32>
    %160 = vector.broadcast %159 : vector<8x1xf32> to vector<8x8xf32>
    %161 = arith.mulf %156, %160 : vector<8x8xf32>
    %cst_96 = arith.constant dense<0.000000e+00> : vector<8x8xf32>
    %162 = tpu.matmul %161, %150, %cst_96 {dimension_numbers = #tpu.dot_dimension_numbers<[1], [0], [0], [1], [0, 0, 1, 1], [], []>} : vector<8x8xf32>, vector<8x8xf32>, vector<8x8xf32> -> vector<8x8xf32>
    %c16_97 = arith.constant 16 : index
    %c0_98 = arith.constant 0 : index
    %163 = vector.load %arg6[%c16_97, %c0_98] : memref<32x32xf32, #tpu.memory_space<vmem>>, vector<8x32xf32>
    %cst_99 = arith.constant dense<0.000000e+00> : vector<8x32xf32>
    %164 = tpu.matmul %162, %163, %cst_99 {dimension_numbers = #tpu.dot_dimension_numbers<[1], [0], [0], [1], [0, 0, 1, 1], [], []>} : vector<8x8xf32>, vector<8x32xf32>, vector<8x32xf32> -> vector<8x32xf32>
    %165 = arith.addf %147, %164 : vector<8x32xf32>
    %c8_100 = arith.constant 8 : index
    %c24_101 = arith.constant 24 : index
    %166 = vector.load %arg15[%c8_100, %c24_101] : memref<16x96xf32, #tpu.memory_space<vmem>>, vector<8x8xf32>
    %c8_102 = arith.constant 8 : index
    %c56_103 = arith.constant 56 : index
    %167 = vector.load %arg15[%c8_102, %c56_103] : memref<16x96xf32, #tpu.memory_space<vmem>>, vector<8x8xf32>
    %c8_104 = arith.constant 8 : index
    %c88_105 = arith.constant 88 : index
    %168 = vector.load %arg15[%c8_104, %c88_105] : memref<16x96xf32, #tpu.memory_space<vmem>>, vector<8x8xf32>
    %cst_106 = arith.constant dense<0.000000e+00> : vector<8x8xf32>
    %169 = tpu.matmul %166, %167, %cst_106 {dimension_numbers = #tpu.dot_dimension_numbers<[1], [1], [0], [0], [0, 0, 1, 0], [], []>} : vector<8x8xf32>, vector<8x8xf32>, vector<8x8xf32> -> vector<8x8xf32>
    %cst_107 = arith.constant dense<0xFF800000> : vector<8xf32>
    %170 = vector.multi_reduction <maximumf>, %169, %cst_107 [1] : vector<8x8xf32> to vector<8xf32>
    %171 = vector.shape_cast %170 : vector<8xf32> to vector<8x1xf32>
    %172 = vector.broadcast %171 : vector<8x1xf32> to vector<8x8xf32>
    %173 = arith.subf %169, %172 : vector<8x8xf32>
    %174 = math.exp %173 : vector<8x8xf32>
    %cst_108 = arith.constant dense<0.000000e+00> : vector<8xf32>
    %175 = vector.multi_reduction <add>, %174, %cst_108 [1] : vector<8x8xf32> to vector<8xf32>
    %176 = vector.shape_cast %175 : vector<8xf32> to vector<8x1xf32>
    %177 = tpu.reciprocal %176 {approx = true} : vector<8x1xf32> -> vector<8x1xf32>
    %178 = vector.broadcast %177 : vector<8x1xf32> to vector<8x8xf32>
    %179 = arith.mulf %174, %178 : vector<8x8xf32>
    %cst_109 = arith.constant dense<0.000000e+00> : vector<8x8xf32>
    %180 = tpu.matmul %179, %168, %cst_109 {dimension_numbers = #tpu.dot_dimension_numbers<[1], [0], [0], [1], [0, 0, 1, 1], [], []>} : vector<8x8xf32>, vector<8x8xf32>, vector<8x8xf32> -> vector<8x8xf32>
    %c24_110 = arith.constant 24 : index
    %c0_111 = arith.constant 0 : index
    %181 = vector.load %arg6[%c24_110, %c0_111] : memref<32x32xf32, #tpu.memory_space<vmem>>, vector<8x32xf32>
    %cst_112 = arith.constant dense<0.000000e+00> : vector<8x32xf32>
    %182 = tpu.matmul %180, %181, %cst_112 {dimension_numbers = #tpu.dot_dimension_numbers<[1], [0], [0], [1], [0, 0, 1, 1], [], []>} : vector<8x8xf32>, vector<8x32xf32>, vector<8x32xf32> -> vector<8x32xf32>
    %183 = arith.addf %165, %182 : vector<8x32xf32>
    %c8_113 = arith.constant 8 : index
    %c0_114 = arith.constant 0 : index
    %184 = vector.load %arg16[%c8_113, %c0_114] : memref<16x32xf32, #tpu.memory_space<vmem>>, vector<8x32xf32>
    tpu.vector_store %arg16[%c8_113, %c0_114], %183 {strides = array<i32>} : memref<16x32xf32, #tpu.memory_space<vmem>>, vector<8x32xf32>,
    %c0_115 = arith.constant 0 : index
    %c0_116 = arith.constant 0 : index
    %185 = vector.load %arg16[%c0_115, %c0_116] : memref<16x32xf32, #tpu.memory_space<vmem>>, vector<16x32xf32>
    %c0_117 = arith.constant 0 : index
    %c0_118 = arith.constant 0 : index
    %186 = vector.load %arg7[%c0_117, %c0_118] : memref<1x32xf32, #tpu.memory_space<vmem>>, vector<1x32xf32>
    %187 = vector.shape_cast %186 : vector<1x32xf32> to vector<32xf32>
    %188 = vector.shape_cast %187 : vector<32xf32> to vector<1x32xf32>
    %189 = vector.broadcast %188 : vector<1x32xf32> to vector<16x32xf32>
    %190 = arith.addf %185, %189 : vector<16x32xf32>
    %191 = arith.addf %190, %0 : vector<16x32xf32>
    %c0_119 = arith.constant 0 : index
    %c0_120 = arith.constant 0 : index
    %192 = vector.load %arg8[%c0_119, %c0_120] : memref<1x32xf32, #tpu.memory_space<vmem>>, vector<1x32xf32>
    %193 = vector.shape_cast %192 : vector<1x32xf32> to vector<32xf32>
    %c0_121 = arith.constant 0 : index
    %c0_122 = arith.constant 0 : index
    %194 = vector.load %arg9[%c0_121, %c0_122] : memref<1x32xf32, #tpu.memory_space<vmem>>, vector<1x32xf32>
    %195 = vector.shape_cast %194 : vector<1x32xf32> to vector<32xf32>
    %cst_123 = arith.constant dense<0.000000e+00> : vector<16xf32>
    %196 = vector.multi_reduction <add>, %191, %cst_123 [1] : vector<16x32xf32> to vector<16xf32>
    %197 = vector.shape_cast %196 : vector<16xf32> to vector<16x1xf32>
    %cst_124 = arith.constant 3.125000e-02 : f32
    %198 = vector.broadcast %cst_124 : f32 to vector<16x1xf32>
    %199 = arith.mulf %197, %198 : vector<16x1xf32>
    %200 = arith.mulf %191, %191 : vector<16x32xf32>
    %cst_125 = arith.constant dense<0.000000e+00> : vector<16xf32>
    %201 = vector.multi_reduction <add>, %200, %cst_125 [1] : vector<16x32xf32> to vector<16xf32>
    %202 = vector.shape_cast %201 : vector<16xf32> to vector<16x1xf32>
    %cst_126 = arith.constant 3.125000e-02 : f32
    %203 = vector.broadcast %cst_126 : f32 to vector<16x1xf32>
    %204 = arith.mulf %202, %203 : vector<16x1xf32>
    %205 = arith.mulf %199, %199 : vector<16x1xf32>
    %206 = arith.subf %204, %205 : vector<16x1xf32>
    %207 = vector.broadcast %199 : vector<16x1xf32> to vector<16x32xf32>
    %208 = arith.subf %191, %207 : vector<16x32xf32>
    %cst_127 = arith.constant 9.99999974E-6 : f32
    %209 = vector.broadcast %cst_127 : f32 to vector<16x1xf32>
    %210 = arith.addf %206, %209 : vector<16x1xf32>
    %211 = math.rsqrt %210 : vector<16x1xf32>
    %212 = vector.broadcast %211 : vector<16x1xf32> to vector<16x32xf32>
    %213 = arith.mulf %208, %212 : vector<16x32xf32>
    %214 = vector.shape_cast %193 : vector<32xf32> to vector<1x32xf32>
    %215 = vector.broadcast %214 : vector<1x32xf32> to vector<16x32xf32>
    %216 = arith.mulf %213, %215 : vector<16x32xf32>
    %217 = vector.shape_cast %195 : vector<32xf32> to vector<1x32xf32>
    %218 = vector.broadcast %217 : vector<1x32xf32> to vector<16x32xf32>
    %219 = arith.addf %216, %218 : vector<16x32xf32>
    %cst_128 = arith.constant 0.000000e+00 : f32
    %220 = vector.broadcast %cst_128 : f32 to vector<16x32xf32>
    %c0_129 = arith.constant 0 : index
    %c0_130 = arith.constant 0 : index
    %221 = vector.load %arg10[%c0_129, %c0_130] : memref<32x64xf32, #tpu.memory_space<vmem>>, vector<32x64xf32>
    %cst_131 = arith.constant dense<0.000000e+00> : vector<16x64xf32>
    %222 = tpu.matmul %219, %221, %cst_131 {dimension_numbers = #tpu.dot_dimension_numbers<[1], [0], [0], [1], [0, 0, 1, 1], [], []>} : vector<16x32xf32>, vector<32x64xf32>, vector<16x64xf32> -> vector<16x64xf32>
    %c0_132 = arith.constant 0 : index
    %c0_133 = arith.constant 0 : index
    %223 = vector.load %arg11[%c0_132, %c0_133] : memref<1x64xf32, #tpu.memory_space<vmem>>, vector<1x64xf32>
    %224 = vector.shape_cast %223 : vector<1x64xf32> to vector<64xf32>
    %225 = vector.shape_cast %224 : vector<64xf32> to vector<1x64xf32>
    %226 = vector.broadcast %225 : vector<1x64xf32> to vector<16x64xf32>
    %227 = arith.addf %222, %226 : vector<16x64xf32>
    %cst_134 = arith.constant 5.000000e-01 : f32
    %228 = vector.broadcast %cst_134 : f32 to vector<16x64xf32>
    %229 = arith.mulf %228, %227 : vector<16x64xf32>
    %cst_135 = arith.constant 0.707106769 : f32
    %230 = vector.broadcast %cst_135 : f32 to vector<16x64xf32>
    %231 = arith.mulf %227, %230 : vector<16x64xf32>
    %232 = math.erf %231 : vector<16x64xf32>
    %cst_136 = arith.constant 1.000000e+00 : f32
    %233 = vector.broadcast %cst_136 : f32 to vector<16x64xf32>
    %234 = arith.addf %233, %232 : vector<16x64xf32>
    %235 = arith.mulf %229, %234 : vector<16x64xf32>
    %c0_137 = arith.constant 0 : index
    %c0_138 = arith.constant 0 : index
    %236 = vector.load %arg12[%c0_137, %c0_138] : memref<64x32xf32, #tpu.memory_space<vmem>>, vector<64x32xf32>
    %cst_139 = arith.constant dense<0.000000e+00> : vector<16x32xf32>
    %237 = tpu.matmul %235, %236, %cst_139 {dimension_numbers = #tpu.dot_dimension_numbers<[1], [0], [0], [1], [0, 0, 1, 1], [], []>} : vector<16x64xf32>, vector<64x32xf32>, vector<16x32xf32> -> vector<16x32xf32>
    %238 = arith.addf %220, %237 : vector<16x32xf32>
    %c0_140 = arith.constant 0 : index
    %c0_141 = arith.constant 0 : index
    %239 = vector.load %arg13[%c0_140, %c0_141] : memref<1x32xf32, #tpu.memory_space<vmem>>, vector<1x32xf32>
    %240 = vector.shape_cast %239 : vector<1x32xf32> to vector<32xf32>
    %241 = vector.shape_cast %240 : vector<32xf32> to vector<1x32xf32>
    %242 = vector.broadcast %241 : vector<1x32xf32> to vector<16x32xf32>
    %243 = arith.addf %238, %242 : vector<16x32xf32>
    %244 = arith.addf %243, %191 : vector<16x32xf32>
    %c0_142 = arith.constant 0 : index
    %c0_143 = arith.constant 0 : index
    %245 = vector.load %arg14[%c0_142, %c0_143] : memref<16x32xf32, #tpu.memory_space<vmem>>, vector<16x32xf32>
    tpu.vector_store %arg14[%c0_142, %c0_143], %244 {strides = array<i32>} : memref<16x32xf32, #tpu.memory_space<vmem>>, vector<16x32xf32>,
    return
  }
  func.func @transform_0(%arg0: i32) -> (i32, i32) {
    %c0_i32 = arith.constant 0 : i32
    %c0_i32_0 = arith.constant 0 : i32
    return %arg0, %c0_i32 : i32, i32
  }
  func.func @transform_1(%arg0: i32) -> (i32, i32) {
    %c0_i32 = arith.constant 0 : i32
    %c0_i32_0 = arith.constant 0 : i32
    %c0_i32_1 = arith.constant 0 : i32
    return %c0_i32, %c0_i32_0 : i32, i32
  }
  func.func @transform_2(%arg0: i32) -> (i32, i32) {
    %c0_i32 = arith.constant 0 : i32
    %c0_i32_0 = arith.constant 0 : i32
    %c0_i32_1 = arith.constant 0 : i32
    return %c0_i32, %c0_i32_0 : i32, i32
  }
  func.func @transform_3(%arg0: i32) -> (i32, i32) {
    %c0_i32 = arith.constant 0 : i32
    %c0_i32_0 = arith.constant 0 : i32
    %c0_i32_1 = arith.constant 0 : i32
    return %c0_i32, %c0_i32_0 : i32, i32
  }
  func.func @transform_4(%arg0: i32) -> (i32, i32) {
    %c0_i32 = arith.constant 0 : i32
    %c0_i32_0 = arith.constant 0 : i32
    %c0_i32_1 = arith.constant 0 : i32
    return %c0_i32, %c0_i32_0 : i32, i32
  }
  func.func @transform_5(%arg0: i32) -> (i32, i32) {
    %c0_i32 = arith.constant 0 : i32
    %c0_i32_0 = arith.constant 0 : i32
    %c0_i32_1 = arith.constant 0 : i32
    return %c0_i32, %c0_i32_0 : i32, i32
  }
  func.func @transform_6(%arg0: i32) -> (i32, i32) {
    %c0_i32 = arith.constant 0 : i32
    %c0_i32_0 = arith.constant 0 : i32
    %c0_i32_1 = arith.constant 0 : i32
    return %c0_i32, %c0_i32_0 : i32, i32
  }
  func.func @transform_7(%arg0: i32) -> (i32, i32) {
    %c0_i32 = arith.constant 0 : i32
    %c0_i32_0 = arith.constant 0 : i32
    %c0_i32_1 = arith.constant 0 : i32
    return %c0_i32, %c0_i32_0 : i32, i32
  }
  func.func @transform_8(%arg0: i32) -> (i32, i32) {
    %c0_i32 = arith.constant 0 : i32
    %c0_i32_0 = arith.constant 0 : i32
    %c0_i32_1 = arith.constant 0 : i32
    return %c0_i32, %c0_i32_0 : i32, i32
  }
  func.func @transform_9(%arg0: i32) -> (i32, i32) {
    %c0_i32 = arith.constant 0 : i32
    %c0_i32_0 = arith.constant 0 : i32
    %c0_i32_1 = arith.constant 0 : i32
    return %c0_i32, %c0_i32_0 : i32, i32
  }
  func.func @transform_10(%arg0: i32) -> (i32, i32) {
    %c0_i32 = arith.constant 0 : i32
    %c0_i32_0 = arith.constant 0 : i32
    %c0_i32_1 = arith.constant 0 : i32
    return %c0_i32, %c0_i32_0 : i32, i32
  }
  func.func @transform_11(%arg0: i32) -> (i32, i32) {
    %c0_i32 = arith.constant 0 : i32
    %c0_i32_0 = arith.constant 0 : i32
    %c0_i32_1 = arith.constant 0 : i32
    return %c0_i32, %c0_i32_0 : i32, i32
  }
  func.func @transform_12(%arg0: i32) -> (i32, i32) {
    %c0_i32 = arith.constant 0 : i32
    %c0_i32_0 = arith.constant 0 : i32
    %c0_i32_1 = arith.constant 0 : i32
    return %c0_i32, %c0_i32_0 : i32, i32
  }
  func.func @transform_13(%arg0: i32) -> (i32, i32) {
    %c0_i32 = arith.constant 0 : i32
    %c0_i32_0 = arith.constant 0 : i32
    return %arg0, %c0_i32 : i32, i32
  }
}

</mosaic_0001>

<bundles_post_ra>
// kernel: tpu_custom_call.1
= control target key start
LH: loop header
LB: loop body
LE: loop exit
PB: predicated region body
PF: predicated region fallthrough
CT: control target
= control target key end

     0   :  { %18 = vsyncpa [#allocation5], 0  ;;  %s3266_s0 = inlined_call_operand.hbm [shape: f32[16,32], index: 0, kind: input, shape index: {}]   ;;  %s3267_s1 = inlined_call_operand.vmem [shape: f32[1,32], index: 1, kind: input, shape index: {}]   ;;  %s3268_s2 = inlined_call_operand.vmem [shape: f32[1,32], index: 2, kind: input, shape index: {}]   ;;  %s3269_s3 = inlined_call_operand.vmem [shape: f32[32,96], index: 3, kind: input, shape index: {}]   ;;  %s3270_s4 = inlined_call_operand.vmem [shape: f32[1,96], index: 4, kind: input, shape index: {}]   ;;  %s3271_s5 = inlined_call_operand.vmem [shape: f32[32,32], index: 5, kind: input, shape index: {}]   ;;  %s3272_s6 = inlined_call_operand.vmem [shape: f32[1,32], index: 6, kind: input, shape index: {}]   ;;  %s3273_s7 = inlined_call_operand.vmem [shape: f32[1,32], index: 7, kind: input, shape index: {}]   ;;  %s3274_s8 = inlined_call_operand.vmem [shape: f32[1,32], index: 8, kind: input, shape index: {}]   ;;  %s3275_s9 = inlined_call_operand.vmem [shape: f32[32,64], index: 9, kind: input, shape index: {}]   ;;  %s3276_s10 = inlined_call_operand.vmem [shape: f32[1,64], index: 10, kind: input, shape index: {}]   ;;  %s3277_s11 = inlined_call_operand.vmem [shape: f32[64,32], index: 11, kind: input, shape index: {}]   ;;  %s3278_s12 = inlined_call_operand.vmem [shape: f32[1,32], index: 12, kind: input, shape index: {}]   ;;  %s3279_s13 = inlined_call_operand.hbm [shape: f32[16,32], index: 13, kind: output, shape index: {}]  }
   0x1   :  { %19 = vsyncpa [#allocation6], 0  ;;  %s2835_s25 = smov [#allocation4]   ;;  %s2787_s29 = scalar_lea.hbm %s3266_s0, 256 }
   0x2   :  { %s25_s26 = sshll.u32 %s2835_s25, 4  ;;  %p2788_p0 = scmp.ne.s32.totalorder %s3266_s0, %s2787_s29  ;;  %s26_s26 = int_to_ptr.vmem [resolvable:$true] %s25_s26 }
   0x3   :  { %p2791_p1 = scmp.lt.u32.totalorder %s2787_s29, %s3266_s0 }
   0x5   :  { %p2793_p2 = pnand %p2791_p1, %p2788_p0 }
   0x7   :  { %2796 = shalt.err (!%p2793_p2)
}
   0x8   :  { %s2797_s17 = scalar_lea.vmem %s26_s26, 256  ;;  %p2802_p4 = scmp.lt.s32.totalorder %s26_s26, %s26_s26 }
   0x9   :  { %p2798_p3 = scmp.ne.s32.totalorder %s26_s26, %s2797_s17  ;;  %p2803_p5 = scmp.lt.s32.totalorder %s2797_s17, %s2797_s17 }
   0xb   :  { %p2804_p6 = por %p2803_p5, %p2802_p4 }
   0xd   :  { %p2805_p7 = pnand %p2804_p6, %p2798_p3 }
   0xf   :  { %2808 = shalt.err (!%p2805_p7)
}
  0x10   :  { %s2836_s18 = smov 128   ;;  %s2837_s19 = smov 8  }
  0x11   :  { %31 = dma.hbm_to_vmem [thread:$0]  %s3266_s0, 256, %s26_s26, [#allocation5], %s2836_s18, %s2836_s18, %s2837_s19  }
  0x12   :  { %2831 = dma.done.wait [#allocation5], 256  }
  0x13   :  { %2832 = vsyncadd [#allocation5], 4294967040  ;;  %vm63_vm0 = vcmask 261120   ;;  %v2937_v0 = vld [vmem:[#allocation4] sm:$0xff]  ;;  %v2939_v1 = vld [vmem:[#allocation4 + $0x8] sm:$0xff]  ;;  %v2838_v40 = vmov 0.0  }
  0x14   :  { %v64_v2 = vsel %vm63_vm0, %v2937_v0, 0.0  ;;  %v72_v3 = vmul.f32 %v2937_v0, %v2937_v0  ;;  %v73_v4 = vmul.f32 %v2939_v1, %v2939_v1  ;;  %v67_v6 = vsel %vm63_vm0, %v2939_v1, 0.0  ;;  %v110_v8 = vld [vmem:[%s3269_s3] sm:$0xff]  ;;  %v111_v9 = vld [vmem:[%s3269_s3 + $0x8] sm:$0xff]  ;;  %v112_v10 = vld [vmem:[%s3269_s3 + $0x10] sm:$0xff]  ;;  %2542 = vmatprep.subr.mxu0 %v2838_v40  ;;  %s2842_s16 = smov 120  }
  0x15   :  { %65 = vadd.xlane.f32.xlu0 %v64_v2  ;;  %v2682_v11 = vpack.c.bf16 %v111_v9, %v110_v8  ;;  %v113_v12 = vld [vmem:[%s3269_s3 + $0x18] sm:$0xff]  ;;  %v2405_v30 = vld [vmem:[%s3267_s1] ss:$0 sm:$0xff]  ;;  %vm202_vm1 = vcmask 785408   ;;  %vm2839_vm2 = vmmov 0   ;;  %vm209_vm3 = vcmask 64512  }
  0x16   :  { %v74_v5 = vsel %vm63_vm0, %v72_v3, 0.0  ;;  %v77_v7 = vsel %vm63_vm0, %v73_v4, 0.0  ;;  %v2686_v13 = vpack.c.bf16 %v113_v12, %v112_v10  ;;  %v2406_v32 = vld [vmem:[%s3268_s2] ss:$0 sm:$0xff]  ;;  %2544 = vmatprep.mubr.msk.f32.mxu0 %vm2839_vm2, %v2838_v40  ;;  %s2840_s2 = smov 88   ;;  %s2843_s17 = smov 64  }
  0x17   :  { %75 = vadd.xlane.f32.xlu1 %v74_v5  ;;  %2683 = vmatprep.subr.bf16.mxu1 %v2682_v11  ;;  %v2407_v41 = vld [vmem:[%s3270_s4] ss:$0 sm:$0xff]  ;;  %s2841_s4 = smov 96   ;;  %s2844_s20 = smov 80   ;;  %vm2302_vm4 = vcmask 523264  }
  0x18   :  { %2685 = vmatpush3.bf16.msra.mxu1 %v2682_v11  ;;  %s2845_s21 = smov 112   ;;  %s2846_s0 = smov 56  }
  0x19   :  { %68 = vadd.xlane.f32.xlu0 %v67_v6  ;;  %2687 = vmatprep.subr.bf16.mxu1 %v2686_v13  ;;  %s2847_s26 = smov 72   ;;  %s2848_s27 = smov 104  }
  0x1a   :  { %s2849_s28 = smov 48   ;;  %s2850_s30 = smov 40  }
  0x1b   :  { %78 = vadd.xlane.f32.xlu1 %v77_v7 }
  0x1c   :  { %2689 = vmatpush3.bf16.msra.mxu1 %v2686_v13 }
  0x1d   :  { %2532 = vmatprep.subr.mxu1 %v2838_v40 }
  0xa2   :  { %v66_v14 = vpop.xlane.xlu0 %65 }
  0xa3   :  { %v70_v15 = vmul.f32 0.03125, %v66_v14  ;;  %v3029_v14 = vld [vmem:[%s3271_s5 + $0x8] sm:$0xff] }
  0xa4   :  { %v76_v16 = vpop.xlane.xlu1 %75 }
  0xa5   :  { %v82_v17 = vmul.f32 %v70_v15, %v70_v15  ;;  %v80_v18 = vmul.f32 0.03125, %v76_v16  ;;  %v86_v28 = vsub.f32 %v2937_v0, %v70_v15 }
  0xa6   :  { %v69_v19 = vpop.xlane.xlu0 %68 }
  0xa7   :  { %v84_v20 = vsub.f32 %v80_v18, %v82_v17  ;;  %v71_v21 = vmul.f32 0.03125, %v69_v19  ;;  %v3036_v17 = vld [vmem:[%s3271_s5] sm:$0xff] }
  0xa8   :  { %v79_v22 = vpop.xlane.xlu1 %78 }
  0xa9   :  { %v88_v23 = vadd.f32 1e-05, %v84_v20  ;;  %v83_v24 = vmul.f32 %v71_v21, %v71_v21  ;;  %v81_v25 = vmul.f32 0.03125, %v79_v22  ;;  %v87_v33 = vsub.f32 %v2939_v1, %v71_v21 }
  0xab   :  { %2743 = vrsqrt.f32 %v88_v23  ;;  %v85_v26 = vsub.f32 %v81_v25, %v83_v24 }
  0xad   :  { %v89_v27 = vadd.f32 1e-05, %v85_v26 }
  0xaf   :  { %2745 = vrsqrt.f32 %v89_v27 }
  0xb5   :  { %v2744_v29 = vpop.eup %2743 }
  0xb6   :  { %v92_v31 = vmul.f32 %v2744_v29, %v86_v28 }
  0xb8   :  { %v100_v34 = vmul.f32 %v2405_v30, %v92_v31 }
  0xb9   :  { %v2746_v35 = vpop.eup %2745 }
  0xba   :  { %v93_v36 = vmul.f32 %v2746_v35, %v87_v33  ;;  %v108_v37 = vadd.f32 %v2406_v32, %v100_v34  ;;  %v3066_v34 = vld [vmem:[%s3271_s5 + $0x10] sm:$0xff] }
  0xbc   :  { %v101_v38 = vmul.f32 %v2405_v30, %v93_v36  ;;  %2529 = vmatprep.mubr.msk.f32.mxu1 %vm63_vm0, %v108_v37 }
  0xbe   :  { %v109_v39 = vadd.f32 %v2406_v32, %v101_v38 }
  0xc0   :  { %2530 = vmatmul.mubr.msk.f32.vlgmr.msra.gmra.mrb[0].mxu1 %vm63_vm0, %v109_v39 }
  0xc1   :  { %2534 = vmatprep.mubr.msk.f32.mxu1 %vm2839_vm2, %v2838_v40 }
 0x193   :  { %v2531_v42 = vpop.f32.mrb[0].mxu1 }
 0x194   :  { %v199_v43 = vadd.f32 %v2531_v42, %v2407_v41  ;;  %v193_v44 = vpop.f32.mrb[1].mxu1 }
 0x195   :  { %v194_v45 = vadd.f32 %v2407_v41, %v193_v44 }
 0x196   :  { %204 = vst.msk [vmem:[#allocation2 + $0x8] sm:$0xff] %vm202_vm1, %v199_v43 }
 0x197   :  { %203 = vst.msk [vmem:[#allocation2] sm:$0xff] %vm202_vm1, %v194_v45 }
 0x19d   :  { %v3076_v41 = vld [vmem:[#allocation2 + $0x8] sm:$0xff] }
 0x19e   :  { %v2982_v46 = vld [vmem:[#allocation2] sm:$0xff] }
 0x19f   :  { %374 = vrot.lane.b32.xlu1 %v2982_v46, %s2840_s2  ;;  %207 = vrot.lane.b32.xlu0 %v2982_v46, %s2841_s4 }
 0x1a3   :  { %372 = vrot.lane.b32.xlu1 %v2982_v46, %s2842_s16 }
 0x211   :  { %v375_v47 = vpop.permute.xlu1 %374  ;;  %v208_v48 = vpop.permute.xlu0 %207 }
 0x212   :  { %2533 = vmatpush3.xpose.msk.msra.mxu1 %vm209_vm3, %v208_v48  ;;  %2543 = vmatpush3.xpose.msk.msra.mxu0 %vm209_vm3, %v375_v47 }
 0x213   :  { %2537 = vmatprep.subr.mxu1 %v2838_v40  ;;  %2552 = vmatprep.subr.mxu0 %v2838_v40 }
 0x215   :  { %v373_v49 = vpop.permute.xlu1 %372  ;;  %2535 = vmatmul.mubr.msk.f32.vlgmr.msra.gmra.mrb[2].mxu1 %vm209_vm3, %v2982_v46 }
 0x216   :  { %2545 = vmatmul.mubr.msk.f32.vlgmr.msra.gmra.mrb[0].mxu0 %vm209_vm3, %v373_v49  ;;  %2539 = vmatprep.mubr.msk.f32.mxu1 %vm2839_vm2, %v2838_v40 }
 0x217   :  { %2554 = vmatprep.mubr.msk.f32.mxu0 %vm2839_vm2, %v2838_v40  ;;  %2553 = vmatpush3.msra.mxu0 %v3029_v14 }
 0x218   :  { %2557 = vmatprep.subr.mxu0 %v2838_v40 }
 0x2e8   :  { %v280_v50 = vpop.f32.mrb[2].mxu1 }
 0x2e9   :  { %v2536_v51 = vpop.f32.mrb[3].mxu1  ;;  %v446_v52 = vpop.f32.mrb[0].mxu0  ;;  %v284_v53 = vsel %vm209_vm3, %v280_v50, -inf }
 0x2ea   :  { %v2546_v54 = vpop.f32.mrb[1].mxu0  ;;  %285 = vmax.xlane.f32.xlu1 %v284_v53  ;;  %v450_v55 = vsel %vm209_vm3, %v446_v52, -inf }
 0x2eb   :  { %451 = vmax.xlane.f32.xlu0 %v450_v55 }
 0x2fb   :  { %295 = vrot.lane.b32.xlu1 %v2982_v46, %s2843_s17 }
 0x2ff   :  { %686 = vrot.lane.b32.xlu1 %v2982_v46, %s2844_s20 }
 0x303   :  { %684 = vrot.lane.b32.xlu1 %v2982_v46, %s2845_s21 }
 0x377   :  { %v286_v56 = vpop.xlane.xlu1 %285 }
 0x378   :  { %v287_v57 = vsub.f32 %v280_v50, %v286_v56  ;;  %v452_v58 = vpop.xlane.xlu0 %451 }
 0x379   :  { %v453_v59 = vsub.f32 %v446_v52, %v452_v58  ;;  %v3095_v52 = vld [vmem:[%s3271_s5 + $0x18] sm:$0xff] }
 0x37a   :  { %v288_v60 = vmul.f32 1.442695, %v287_v57 }
 0x37b   :  { %v454_v61 = vmul.f32 1.442695, %v453_v59  ;;  %v296_v62 = vpop.permute.xlu1 %295 }
 0x37c   :  { %2747 = vpow2.f32 %v288_v60  ;;  %2538 = vmatpush3.msra.mxu1 %v296_v62 }
 0x37d   :  { %2547 = vmatprep.subr.mxu1 %v2838_v40  ;;  %2749 = vpow2.f32 %v454_v61 }
 0x37f   :  { %v687_v12 = vpop.permute.xlu1 %686 }
 0x383   :  { %v685_v13 = vpop.permute.xlu1 %684 }
 0x386   :  { %v2748_v63 = vpop.eup %2747 }
 0x387   :  { %v290_v2 = vsel %vm209_vm3, %v2748_v63, 0.0  ;;  %v2750_v3 = vpop.eup %2749 }
 0x388   :  { %291 = vadd.xlane.f32.xlu0 %v290_v2  ;;  %v456_v4 = vsel %vm209_vm3, %v2750_v3, 0.0 }
 0x38c   :  { %457 = vadd.xlane.f32.xlu0 %v456_v4 }
 0x3a2   :  { %461 = vrot.lane.b32.xlu0 %v2982_v46, %s2846_s0 }
 0x415   :  { %v292_v5 = vpop.xlane.xlu0 %291 }
 0x416   :  { %2751 = vrcp.f32 %v292_v5 }
 0x419   :  { %v458_v6 = vpop.xlane.xlu0 %457 }
 0x41a   :  { %2753 = vrcp.f32 %v458_v6 }
 0x41d   :  { %v462_v9 = vpop.permute.xlu0 %461 }
 0x420   :  { %v2752_v7 = vpop.eup %2751 }
 0x421   :  { %v294_v8 = vmul.f32 %v2752_v7, %v2748_v63 }
 0x423   :  { %2540 = vmatmul.mubr.msk.f32.vlgmr.msra.gmra.mrb[4].mxu1 %vm209_vm3, %v294_v8 }
 0x424   :  { %v2754_v10 = vpop.eup %2753  ;;  %2548 = vmatpush3.msra.mxu1 %v462_v9  ;;  %2549 = vmatprep.mubr.msk.f32.mxu1 %vm2839_vm2, %v2838_v40 }
 0x425   :  { %v460_v11 = vmul.f32 %v2754_v10, %v2750_v3  ;;  %2562 = vmatprep.subr.mxu1 %v2838_v40 }
 0x427   :  { %2550 = vmatmul.mubr.msk.f32.vlgmr.msra.gmra.mrb[6].mxu1 %vm209_vm3, %v460_v11 }
 0x428   :  { %2564 = vmatprep.mubr.msk.f32.mxu1 %vm2839_vm2, %v2838_v40 }
 0x42b   :  { %2563 = vmatpush3.xpose.msk.msra.mxu1 %vm209_vm3, %v687_v12 }
 0x42c   :  { %2567 = vmatprep.subr.mxu1 %v2838_v40 }
 0x42e   :  { %2565 = vmatmul.mubr.msk.f32.vlgmr.msra.gmra.mrb[8].mxu1 %vm209_vm3, %v685_v13 }
 0x42f   :  { %2569 = vmatprep.mubr.msk.f32.mxu1 %vm2839_vm2, %v2838_v40 }
 0x4f6   :  { %v367_v15 = vpop.f32.mrb[4].mxu1 }
 0x4f7   :  { %v2541_v16 = vpop.f32.mrb[5].mxu1 }
 0x4fa   :  { %v533_v18 = vpop.f32.mrb[6].mxu1 }
 0x4fb   :  { %v2551_v19 = vpop.f32.mrb[7].mxu1  ;;  %2555 = vmatmul.mubr.msk.f32.vlgmr.msra.gmra.mrb[2].mxu0 %vm209_vm3, %v533_v18 }
 0x4fc   :  { %2558 = vmatpush3.msra.mxu0 %v3036_v17  ;;  %2559 = vmatprep.mubr.msk.f32.mxu0 %vm2839_vm2, %v2838_v40 }
 0x4fd   :  { %2572 = vmatprep.subr.mxu0 %v2838_v40 }
 0x501   :  { %v758_v20 = vpop.f32.mrb[8].mxu1 }
 0x502   :  { %v2566_v21 = vpop.f32.mrb[9].mxu1  ;;  %v762_v22 = vsel %vm209_vm3, %v758_v20, -inf }
 0x503   :  { %763 = vmax.xlane.f32.xlu1 %v762_v22  ;;  %2560 = vmatmul.mubr.msk.f32.vlgmr.msra.gmra.mrb[2].mxu0 %vm209_vm3, %v367_v15 }
 0x504   :  { %2574 = vmatprep.mubr.msk.f32.mxu0 %vm2839_vm2, %v2838_v40  ;;  %2573 = vmatpush3.msra.mxu0 %v3066_v34 }
 0x505   :  { %2582 = vmatprep.subr.mxu0 %v2838_v40 }
 0x514   :  { %926 = vrot.lane.b32.xlu1 %v2982_v46, %s2847_s26 }
 0x518   :  { %924 = vrot.lane.b32.xlu1 %v2982_v46, %s2848_s27 }
 0x590   :  { %v764_v23 = vpop.xlane.xlu1 %763 }
 0x591   :  { %v765_v24 = vsub.f32 %v758_v20, %v764_v23 }
 0x593   :  { %v766_v25 = vmul.f32 1.442695, %v765_v24 }
 0x594   :  { %v927_v31 = vpop.permute.xlu1 %926 }
 0x595   :  { %2755 = vpow2.f32 %v766_v25 }
 0x598   :  { %v925_v33 = vpop.permute.xlu1 %924 }
 0x59f   :  { %v2756_v26 = vpop.eup %2755 }
 0x5a0   :  { %v768_v27 = vsel %vm209_vm3, %v2756_v26, 0.0 }
 0x5a1   :  { %769 = vadd.xlane.f32.xlu0 %v768_v27 }
 0x5b7   :  { %773 = vrot.lane.b32.xlu0 %v2982_v46, %s2849_s28 }
 0x62e   :  { %v770_v28 = vpop.xlane.xlu0 %769 }
 0x62f   :  { %2757 = vrcp.f32 %v770_v28 }
 0x632   :  { %v774_v29 = vpop.permute.xlu0 %773 }
 0x633   :  { %2568 = vmatpush3.msra.mxu1 %v774_v29 }
 0x634   :  { %2577 = vmatprep.subr.mxu1 %v2838_v40 }
 0x639   :  { %v2758_v30 = vpop.eup %2757 }
 0x63a   :  { %v772_v32 = vmul.f32 %v2758_v30, %v2756_v26 }
 0x63c   :  { %2570 = vmatmul.mubr.msk.f32.vlgmr.msra.gmra.mrb[10].mxu1 %vm209_vm3, %v772_v32 }
 0x63d   :  { %2578 = vmatpush3.xpose.msk.msra.mxu1 %vm209_vm3, %v927_v31  ;;  %2579 = vmatprep.mubr.msk.f32.mxu1 %vm2839_vm2, %v2838_v40 }
 0x63e   :  { %2592 = vmatprep.subr.mxu1 %v2838_v40 }
 0x640   :  { %2580 = vmatmul.mubr.msk.f32.vlgmr.msra.gmra.mrb[12].mxu1 %vm209_vm3, %v925_v33 }
 0x641   :  { %2594 = vmatprep.mubr.msk.f32.mxu1 %vm2839_vm2, %v2838_v40 }
 0x70f   :  { %v845_v35 = vpop.f32.mrb[10].mxu1 }
 0x710   :  { %v2571_v36 = vpop.f32.mrb[11].mxu1  ;;  %2575 = vmatmul.mubr.msk.f32.vlgmr.msra.gmra.mrb[2].mxu0 %vm209_vm3, %v845_v35 }
 0x711   :  { %2584 = vmatprep.mubr.msk.f32.mxu0 %vm2839_vm2, %v2838_v40 }
 0x713   :  { %v998_v37 = vpop.f32.mrb[12].mxu1 }
 0x714   :  { %v2581_v38 = vpop.f32.mrb[13].mxu1  ;;  %v1002_v39 = vsel %vm209_vm3, %v998_v37, -inf }
 0x715   :  { %1003 = vmax.xlane.f32.xlu0 %v1002_v39 }
 0x72b   :  { %1013 = vrot.lane.b32.xlu0 %v2982_v46, %s2850_s30 }
 0x72f   :  { %1333 = vrot.lane.b32.xlu0 %v3076_v41, %s2840_s2 }
 0x7a2   :  { %v1004_v42 = vpop.xlane.xlu0 %1003 }
 0x7a3   :  { %v1005_v43 = vsub.f32 %v998_v37, %v1004_v42 }
 0x7a5   :  { %v1006_v44 = vmul.f32 1.442695, %v1005_v43 }
 0x7a6   :  { %v1014_v45 = vpop.permute.xlu0 %1013 }
 0x7a7   :  { %2759 = vpow2.f32 %v1006_v44  ;;  %2583 = vmatpush3.msra.mxu0 %v1014_v45  ;;  %v2442_v44 = vld [vmem:[%s3272_s6] ss:$0 sm:$0xff] }
 0x7a8   :  { %2587 = vmatprep.subr.mxu0 %v2838_v40 }
 0x7aa   :  { %v1334_v57 = vpop.permute.xlu0 %1333 }
 0x7b1   :  { %v2760_v47 = vpop.eup %2759 }
 0x7b2   :  { %v1008_v48 = vsel %vm209_vm3, %v2760_v47, 0.0 }
 0x7b3   :  { %1009 = vadd.xlane.f32.xlu1 %v1008_v48 }
 0x7c4   :  { %1167 = vrot.lane.b32.xlu1 %v3076_v41, %s2841_s4 }
 0x7c8   :  { %1331 = vrot.lane.b32.xlu1 %v3076_v41, %s2842_s16 }
 0x840   :  { %v1010_v46 = vpop.xlane.xlu1 %1009 }
 0x841   :  { %2761 = vrcp.f32 %v1010_v46 }
 0x844   :  { %v1168_v49 = vpop.permute.xlu1 %1167 }
 0x845   :  { %2593 = vmatpush3.xpose.msk.msra.mxu1 %vm209_vm3, %v1168_v49 }
 0x846   :  { %2597 = vmatprep.subr.mxu1 %v2838_v40 }
 0x848   :  { %2595 = vmatmul.mubr.msk.f32.vlgmr.msra.gmra.mrb[14].mxu1 %vm209_vm3, %v3076_v41  ;;  %v1332_v59 = vpop.permute.xlu1 %1331 }
 0x849   :  { %2599 = vmatprep.mubr.msk.f32.mxu1 %vm2839_vm2, %v2838_v40 }
 0x84b   :  { %v2762_v50 = vpop.eup %2761 }
 0x84c   :  { %v1012_v51 = vmul.f32 %v2762_v50, %v2760_v47 }
 0x84e   :  { %2585 = vmatmul.mubr.msk.f32.vlgmr.msra.gmra.mrb[4].mxu0 %vm209_vm3, %v1012_v51 }
 0x84f   :  { %2588 = vmatpush3.msra.mxu0 %v3095_v52  ;;  %2589 = vmatprep.mubr.msk.f32.mxu0 %vm2839_vm2, %v2838_v40 }
 0x850   :  { %2602 = vmatprep.subr.mxu0 %v2838_v40 }
 0x91b   :  { %v1239_v53 = vpop.f32.mrb[14].mxu1 }
 0x91c   :  { %v2596_v54 = vpop.f32.mrb[15].mxu1  ;;  %v1243_v55 = vsel %vm209_vm3, %v1239_v53, -inf }
 0x91d   :  { %1244 = vmax.xlane.f32.xlu0 %v1243_v55 }
 0x921   :  { %v1085_v56 = vpop.f32.mrb[4].mxu0 }
 0x922   :  { %v2586_v58 = vpop.f32.mrb[5].mxu0  ;;  %2590 = vmatmul.mubr.msk.f32.vlgmr.msra.gmra.mrb[2].mxu0 %vm209_vm3, %v1085_v56 }
 0x923   :  { %2603 = vmatpush3.xpose.msk.msra.mxu0 %vm209_vm3, %v1334_v57  ;;  %2604 = vmatprep.mubr.msk.f32.mxu0 %vm2839_vm2, %v2838_v40 }
 0x924   :  { %2612 = vmatprep.subr.mxu0 %v2838_v40 }
 0x926   :  { %2605 = vmatmul.mubr.msk.f32.vlgmr.msra.gmra.mrb[6].mxu0 %vm209_vm3, %v1332_v59 }
 0x927   :  { %2613 = vmatpush3.msra.mxu0 %v3029_v14  ;;  %2614 = vmatprep.mubr.msk.f32.mxu0 %vm2839_vm2, %v2838_v40 }
 0x928   :  { %2617 = vmatprep.subr.mxu0 %v2838_v40 }
 0x9aa   :  { %v1245_v60 = vpop.xlane.xlu0 %1244 }
 0x9ab   :  { %v1246_v61 = vsub.f32 %v1239_v53, %v1245_v60 }
 0x9ad   :  { %v1247_v62 = vmul.f32 1.442695, %v1246_v61 }
 0x9af   :  { %2763 = vpow2.f32 %v1247_v62 }
 0x9b9   :  { %v2764_v63 = vpop.eup %2763 }
 0x9ba   :  { %v1249_v2 = vsel %vm209_vm3, %v2764_v63, 0.0 }
 0x9bb   :  { %1250 = vadd.xlane.f32.xlu0 %v1249_v2 }
 0x9f5   :  { %v1159_v3 = vpop.f32.mrb[2].mxu0 }
 0x9f6   :  { %1164 = vst.msk [vmem:[#allocation3] sm:$0xff] %vm63_vm0, %v1159_v3  ;;  %v2591_v4 = vpop.f32.mrb[3].mxu0 }
 0x9f9   :  { %v1405_v5 = vpop.f32.mrb[6].mxu0 }
 0x9fa   :  { %v2606_v6 = vpop.f32.mrb[7].mxu0  ;;  %v1409_v7 = vsel %vm209_vm3, %v1405_v5, -inf }
 0x9fb   :  { %1410 = vmax.xlane.f32.xlu1 %v1409_v7  ;;  %v2443_v7 = vld [vmem:[%s3273_s7] ss:$0 sm:$0xff] }
 0x9fd   :  { %v2124_v43 = vld [vmem:[#allocation3] sm:$0xff] }
 0x9fe   :  { %v2133_v48 = vadd.f32 %v2442_v44, %v2124_v43  ;;  %v2288_v43 = vld [vmem:[%s3277_s11 + $0x8] sm:$0xff] }
 0xa00   :  { %v3170_v51 = vadd.f32 %v2133_v48, %v2937_v0 }
 0xa02   :  { %v2139_v53 = vsel %vm63_vm0, %v3170_v51, 0.0  ;;  %v2147_v54 = vmul.f32 %v3170_v51, %v3170_v51 }
 0xa04   :  { %v2149_v55 = vsel %vm63_vm0, %v2147_v54, 0.0  ;;  %v2294_v54 = vld [vmem:[%s3277_s11 + $0x38] sm:$0xff] }
 0xa0c   :  { %1420 = vrot.lane.b32.xlu1 %v3076_v41, %s2846_s0 }
 0xa10   :  { %1645 = vrot.lane.b32.xlu1 %v3076_v41, %s2844_s20 }
 0xa14   :  { %1643 = vrot.lane.b32.xlu1 %v3076_v41, %s2845_s21 }
 0xa48   :  { %v1251_v13 = vpop.xlane.xlu0 %1250 }
 0xa88   :  { %v1411_v8 = vpop.xlane.xlu1 %1410 }
 0xa89   :  { %v1412_v9 = vsub.f32 %v1405_v5, %v1411_v8 }
 0xa8b   :  { %v1413_v10 = vmul.f32 1.442695, %v1412_v9  ;;  %v2444_v9 = vld [vmem:[%s3274_s8] ss:$0 sm:$0xff]  ;;  %s2851_s8 = smov [#allocation7]  }
 0xa8c   :  { %v1421_v19 = vpop.permute.xlu1 %1420 }
 0xa8d   :  { %2765 = vpow2.f32 %v1413_v10 }
 0xa8e   :  { %2767 = vrcp.f32 %v1251_v13 }
 0xa90   :  { %v1646_v21 = vpop.permute.xlu1 %1645 }
 0xa94   :  { %v1644_v23 = vpop.permute.xlu1 %1643 }
 0xa97   :  { %v2766_v11 = vpop.eup %2765 }
 0xa98   :  { %v1415_v12 = vsel %vm209_vm3, %v2766_v11, 0.0  ;;  %v2768_v15 = vpop.eup %2767 }
 0xa99   :  { %1416 = vadd.xlane.f32.xlu0 %v1415_v12  ;;  %v1253_v16 = vmul.f32 %v2768_v15, %v2764_v63 }
 0xaaf   :  { %1254 = vrot.lane.b32.xlu0 %v3076_v41, %s2843_s17  ;;  %s2393_s17 = sshll.u32 %s2851_s8, 4  ;;  %s2394_s17 = int_to_ptr.vmem [resolvable:$true] %s2393_s17 }
 0xab0   :  { %s2809_s20 = scalar_lea.vmem %s2394_s17, 256  ;;  %p2814_p9 = scmp.lt.s32.totalorder %s2394_s17, %s2394_s17 }
 0xab1   :  { %p2810_p8 = scmp.ne.s32.totalorder %s2394_s17, %s2809_s20  ;;  %p2815_p10 = scmp.lt.s32.totalorder %s2809_s20, %s2809_s20 }
 0xab3   :  { %p2816_p11 = por %p2815_p10, %p2814_p9 }
 0xab5   :  { %p2817_p12 = pnand %p2816_p11, %p2810_p8 }
 0xb26   :  { %v1417_v14 = vpop.xlane.xlu0 %1416 }
 0xb27   :  { %2769 = vrcp.f32 %v1417_v14 }
 0xb2a   :  { %v1255_v18 = vpop.permute.xlu0 %1254 }
 0xb2b   :  { %2598 = vmatpush3.msra.mxu1 %v1255_v18 }
 0xb2c   :  { %2600 = vmatmul.mubr.msk.f32.vlgmr.msra.gmra.mrb[16].mxu1 %vm209_vm3, %v1253_v16  ;;  %2607 = vmatprep.subr.mxu1 %v2838_v40 }
 0xb2d   :  { %2608 = vmatpush3.msra.mxu1 %v1421_v19  ;;  %2609 = vmatprep.mubr.msk.f32.mxu1 %vm2839_vm2, %v2838_v40 }
 0xb2e   :  { %2622 = vmatprep.subr.mxu1 %v2838_v40 }
 0xb31   :  { %v2770_v20 = vpop.eup %2769 }
 0xb32   :  { %v1419_v22 = vmul.f32 %v2770_v20, %v2766_v11 }
 0xb34   :  { %2610 = vmatmul.mubr.msk.f32.vlgmr.msra.gmra.mrb[18].mxu1 %vm209_vm3, %v1419_v22 }
 0xb35   :  { %2623 = vmatpush3.xpose.msk.msra.mxu1 %vm209_vm3, %v1646_v21  ;;  %2624 = vmatprep.mubr.msk.f32.mxu1 %vm2839_vm2, %v2838_v40 }
 0xb36   :  { %2627 = vmatprep.subr.mxu1 %v2838_v40 }
 0xb38   :  { %2625 = vmatmul.mubr.msk.f32.vlgmr.msra.gmra.mrb[20].mxu1 %vm209_vm3, %v1644_v23 }
 0xb39   :  { %2629 = vmatprep.mubr.msk.f32.mxu1 %vm2839_vm2, %v2838_v40 }
 0xbff   :  { %v1326_v24 = vpop.f32.mrb[16].mxu1 }
 0xc00   :  { %v2601_v25 = vpop.f32.mrb[17].mxu1 }
 0xc01   :  { %v2186_v25 = vld [vmem:[%s3275_s9 + $0x8] sm:$0xff] }
 0xc07   :  { %v1492_v26 = vpop.f32.mrb[18].mxu1 }
 0xc08   :  { %v2611_v27 = vpop.f32.mrb[19].mxu1  ;;  %2615 = vmatmul.mubr.msk.f32.vlgmr.msra.gmra.mrb[8].mxu0 %vm209_vm3, %v1492_v26  ;;  %v2187_v26 = vld [vmem:[%s3275_s9 + $0x10] sm:$0xff] }
 0xc09   :  { %2618 = vmatpush3.msra.mxu0 %v3036_v17  ;;  %2619 = vmatprep.mubr.msk.f32.mxu0 %vm2839_vm2, %v2838_v40  ;;  %v2188_v27 = vld [vmem:[%s3275_s9 + $0x18] sm:$0xff] }
 0xc0a   :  { %2632 = vmatprep.subr.mxu0 %v2838_v40 }
 0xc0b   :  { %v1717_v28 = vpop.f32.mrb[20].mxu1 }
 0xc0c   :  { %v2626_v29 = vpop.f32.mrb[21].mxu1  ;;  %v1721_v30 = vsel %vm209_vm3, %v1717_v28, -inf }
 0xc0d   :  { %1722 = vmax.xlane.f32.xlu0 %v1721_v30 }
 0xc10   :  { %2620 = vmatmul.mubr.msk.f32.vlgmr.msra.gmra.mrb[8].mxu0 %vm209_vm3, %v1326_v24  ;;  %v2185_v24 = vld [vmem:[%s3275_s9] sm:$0xff] }
 0xc11   :  { %2633 = vmatpush3.msra.mxu0 %v3066_v34  ;;  %2634 = vmatprep.mubr.msk.f32.mxu0 %vm2839_vm2, %v2838_v40 }
 0xc12   :  { %2642 = vmatprep.subr.mxu0 %v2838_v40 }
 0xc23   :  { %1732 = vrot.lane.b32.xlu0 %v3076_v41, %s2849_s28 }
 0xc27   :  { %1883 = vrot.lane.b32.xlu0 %v3076_v41, %s2848_s27 }
 0xc9a   :  { %v1723_v17 = vpop.xlane.xlu0 %1722 }
 0xc9b   :  { %v1724_v31 = vsub.f32 %v1717_v28, %v1723_v17  ;;  %v2694_v28 = vpack.c.bf16 %v2188_v27, %v2187_v26 }
 0xc9d   :  { %v1725_v32 = vmul.f32 1.442695, %v1724_v31 }
 0xc9e   :  { %v1733_v33 = vpop.permute.xlu0 %1732 }
 0xc9f   :  { %2771 = vpow2.f32 %v1725_v32  ;;  %2628 = vmatpush3.msra.mxu1 %v1733_v33 }
 0xca0   :  { %2637 = vmatprep.subr.mxu1 %v2838_v40 }
 0xca2   :  { %v1884_v42 = vpop.permute.xlu0 %1883 }
 0xca9   :  { %v2772_v34 = vpop.eup %2771 }
 0xcaa   :  { %v1727_v35 = vsel %vm209_vm3, %v2772_v34, 0.0 }
 0xcab   :  { %1728 = vadd.xlane.f32.xlu1 %v1727_v35 }
 0xcbc   :  { %1885 = vrot.lane.b32.xlu1 %v3076_v41, %s2847_s26 }
 0xd38   :  { %v1729_v36 = vpop.xlane.xlu1 %1728 }
 0xd39   :  { %2773 = vrcp.f32 %v1729_v36 }
 0xd3c   :  { %v1886_v39 = vpop.permute.xlu1 %1885 }
 0xd43   :  { %v2774_v37 = vpop.eup %2773 }
 0xd44   :  { %v1731_v38 = vmul.f32 %v2774_v37, %v2772_v34 }
 0xd46   :  { %2630 = vmatmul.mubr.msk.f32.vlgmr.msra.gmra.mrb[22].mxu1 %vm209_vm3, %v1731_v38 }
 0xd47   :  { %2638 = vmatpush3.xpose.msk.msra.mxu1 %vm209_vm3, %v1886_v39  ;;  %2639 = vmatprep.mubr.msk.f32.mxu1 %vm2839_vm2, %v2838_v40 }
 0xd4a   :  { %2640 = vmatmul.mubr.msk.f32.vlgmr.msra.gmra.mrb[24].mxu1 %vm209_vm3, %v1884_v42  ;;  %v2287_v42 = vld [vmem:[%s3277_s11] sm:$0xff] }
 0xe19   :  { %v1804_v45 = vpop.f32.mrb[22].mxu1 }
 0xe1a   :  { %v2631_v47 = vpop.f32.mrb[23].mxu1  ;;  %2635 = vmatmul.mubr.msk.f32.vlgmr.msra.gmra.mrb[8].mxu0 %vm209_vm3, %v1804_v45  ;;  %v2289_v45 = vld [vmem:[%s3277_s11 + $0x10] sm:$0xff] }
 0xe1b   :  { %2644 = vmatprep.mubr.msk.f32.mxu0 %vm2839_vm2, %v2838_v40  ;;  %v2290_v47 = vld [vmem:[%s3277_s11 + $0x18] sm:$0xff] }
 0xe1c   :  { %v2702_v48 = vpack.c.bf16 %v2290_v47, %v2289_v45 }
 0xe1d   :  { %v1957_v46 = vpop.f32.mrb[24].mxu1 }
 0xe1e   :  { %v2641_v49 = vpop.f32.mrb[25].mxu1  ;;  %v1961_v50 = vsel %vm209_vm3, %v1957_v46, -inf }
 0xe1f   :  { %1962 = vmax.xlane.f32.xlu1 %v1961_v50  ;;  %v2292_v49 = vld [vmem:[%s3277_s11 + $0x28] sm:$0xff] }
 0xe23   :  { %2140 = vadd.xlane.f32.xlu1 %v2139_v53  ;;  %v2293_v53 = vld [vmem:[%s3277_s11 + $0x30] sm:$0xff] }
 0xe27   :  { %2150 = vadd.xlane.f32.xlu1 %v2149_v55  ;;  %v2710_v55 = vpack.c.bf16 %v2294_v54, %v2293_v53 }
 0xeac   :  { %v1963_v56 = vpop.xlane.xlu1 %1962 }
 0xead   :  { %v1964_v57 = vsub.f32 %v1957_v46, %v1963_v56  ;;  %v2291_v46 = vld [vmem:[%s3277_s11 + $0x20] sm:$0xff] }
 0xeae   :  { %v2706_v50 = vpack.c.bf16 %v2292_v49, %v2291_v46  ;;  %v2445_v56 = vld [vmem:[%s3276_s10] ss:$0 sm:$0xff] }
 0xeaf   :  { %v1965_v58 = vmul.f32 1.442695, %v1964_v57 }
 0xeb0   :  { %v2141_v59 = vpop.xlane.xlu1 %2140 }
 0xeb1   :  { %2775 = vpow2.f32 %v1965_v58  ;;  %v2145_v60 = vmul.f32 0.03125, %v2141_v59 }
 0xeb3   :  { %v2157_v0 = vmul.f32 %v2145_v60, %v2145_v60  ;;  %v2161_v5 = vsub.f32 %v3170_v51, %v2145_v60 }
 0xeb4   :  { %v2151_v61 = vpop.xlane.xlu1 %2150 }
 0xeb5   :  { %v2155_v62 = vmul.f32 0.03125, %v2151_v61 }
 0xeb7   :  { %v2159_v63 = vsub.f32 %v2155_v62, %v2157_v0 }
 0xeb9   :  { %v2163_v2 = vadd.f32 1e-05, %v2159_v63 }
 0xebb   :  { %v2776_v3 = vpop.eup %2775  ;;  %2777 = vrsqrt.f32 %v2163_v2 }
 0xebc   :  { %v1967_v4 = vsel %vm209_vm3, %v2776_v3, 0.0 }
 0xebd   :  { %1968 = vadd.xlane.f32.xlu0 %v1967_v4 }
 0xec5   :  { %v2778_v6 = vpop.eup %2777 }
 0xec6   :  { %v2167_v8 = vmul.f32 %v2778_v6, %v2161_v5 }
 0xec8   :  { %v2175_v10 = vmul.f32 %v2443_v7, %v2167_v8  ;;  %v2448_v8 = vld [vmem:[%s3278_s12] ss:$0 sm:$0xff] }
 0xeca   :  { %v2183_v11 = vadd.f32 %v2444_v9, %v2175_v10 }
 0xecc   :  { %2660 = vmatprep.mubr.msk.f32.mxu1 %vm63_vm0, %v2183_v11 }
 0xed3   :  { %1972 = vrot.lane.b32.xlu0 %v3076_v41, %s2850_s30 }
 0xf4a   :  { %v1969_v12 = vpop.xlane.xlu0 %1968 }
 0xf4b   :  { %2779 = vrcp.f32 %v1969_v12 }
 0xf4e   :  { %v1973_v13 = vpop.permute.xlu0 %1972 }
 0xf4f   :  { %2643 = vmatpush3.msra.mxu0 %v1973_v13 }
 0xf50   :  { %2647 = vmatprep.subr.mxu0 %v2838_v40 }
 0xf55   :  { %v2780_v14 = vpop.eup %2779 }
 0xf56   :  { %v1971_v15 = vmul.f32 %v2780_v14, %v2776_v3 }
 0xf58   :  { %2645 = vmatmul.mubr.msk.f32.vlgmr.msra.gmra.mrb[10].mxu0 %vm209_vm3, %v1971_v15 }
 0xf59   :  { %2648 = vmatpush3.msra.mxu0 %v3095_v52  ;;  %2649 = vmatprep.mubr.msk.f32.mxu0 %vm2839_vm2, %v2838_v40 }
0x102b   :  { %v2044_v16 = vpop.f32.mrb[10].mxu0 }
0x102c   :  { %v2646_v18 = vpop.f32.mrb[11].mxu0  ;;  %2650 = vmatmul.mubr.msk.f32.vlgmr.msra.gmra.mrb[8].mxu0 %vm209_vm3, %v2044_v16 }
0x10ff   :  { %v2118_v41 = vpop.f32.mrb[8].mxu0 }
0x1100   :  { %2123 = vst.msk [vmem:[#allocation3 + $0x8] sm:$0xff] %vm63_vm0, %v2118_v41  ;;  %v2651_v19 = vpop.f32.mrb[9].mxu0 }
0x1107   :  { %v2125_v20 = vld [vmem:[#allocation3 + $0x8] sm:$0xff] }
0x1108   :  { %v2134_v21 = vadd.f32 %v2442_v44, %v2125_v20  ;;  %v2698_v44 = vpack.c.bf16 %v2288_v43, %v2287_v42 }
0x110a   :  { %v3196_v22 = vadd.f32 %v2134_v21, %v2939_v1  ;;  %v2690_v1 = vpack.c.bf16 %v2186_v25, %v2185_v24  ;;  %2699 = vmatprep.subr.bf16.mxu0 %v2698_v44 }
0x110b   :  { %2701 = vmatpush3.bf16.msra.mxu0 %v2698_v44 }
0x110c   :  { %v2142_v23 = vsel %vm63_vm0, %v3196_v22, 0.0  ;;  %v2148_v52 = vmul.f32 %v3196_v22, %v3196_v22  ;;  %2691 = vmatprep.subr.bf16.mxu1 %v2690_v1  ;;  %2703 = vmatprep.subr.bf16.mxu0 %v2702_v48 }
0x110d   :  { %2143 = vadd.xlane.f32.xlu1 %v2142_v23  ;;  %2693 = vmatpush3.bf16.msra.mxu1 %v2690_v1 }
0x110e   :  { %v2152_v40 = vsel %vm63_vm0, %v2148_v52, 0.0  ;;  %2695 = vmatprep.subr.bf16.mxu1 %v2694_v28 }
0x110f   :  { %2705 = vmatpush3.bf16.msra.mxu0 %v2702_v48 }
0x1110   :  { %2707 = vmatprep.subr.bf16.mxu0 %v2706_v50 }
0x1111   :  { %2153 = vadd.xlane.f32.xlu1 %v2152_v40  ;;  %2697 = vmatpush3.bf16.msra.mxu1 %v2694_v28 }
0x1113   :  { %2709 = vmatpush3.bf16.msra.mxu0 %v2706_v50 }
0x1114   :  { %2711 = vmatprep.subr.bf16.mxu0 %v2710_v55 }
0x1117   :  { %2713 = vmatpush3.bf16.msra.mxu0 %v2710_v55 }
0x119a   :  { %v2144_v29 = vpop.xlane.xlu1 %2143 }
0x119b   :  { %v2146_v30 = vmul.f32 0.03125, %v2144_v29 }
0x119d   :  { %v2158_v31 = vmul.f32 %v2146_v30, %v2146_v30  ;;  %v2162_v35 = vsub.f32 %v3196_v22, %v2146_v30 }
0x119e   :  { %v2154_v17 = vpop.xlane.xlu1 %2153 }
0x119f   :  { %v2156_v32 = vmul.f32 0.03125, %v2154_v17 }
0x11a1   :  { %v2160_v33 = vsub.f32 %v2156_v32, %v2158_v31 }
0x11a3   :  { %v2164_v34 = vadd.f32 1e-05, %v2160_v33 }
0x11a5   :  { %2781 = vrsqrt.f32 %v2164_v34 }
0x11af   :  { %v2782_v36 = vpop.eup %2781 }
0x11b0   :  { %v2168_v37 = vmul.f32 %v2782_v36, %v2162_v35 }
0x11b2   :  { %v2176_v38 = vmul.f32 %v2443_v7, %v2168_v37 }
0x11b4   :  { %v2184_v39 = vadd.f32 %v2444_v9, %v2176_v38 }
0x11b6   :  { %2661 = vmatmul.mubr.msk.f32.vlgmr.msra.gmra.mrb[26].mxu1 %vm63_vm0, %v2184_v39 }
0x1289   :  { %v2662_v57 = vpop.f32.mrb[26].mxu1 }
0x128a   :  { %v2274_v58 = vadd.f32 %v2662_v57, %v2445_v56  ;;  %v2268_v59 = vpop.f32.mrb[27].mxu1 }
0x128b   :  { %v2269_v60 = vadd.f32 %v2445_v56, %v2268_v59 }
0x128c   :  { %v2280_v61 = vmul.f32 0.70710677, %v2274_v58  ;;  %v2278_v5 = vmul.f32 0.5, %v2274_v58 }
0x128d   :  { %v2279_v0 = vmul.f32 0.70710677, %v2269_v60  ;;  %v2277_v3 = vmul.f32 0.5, %v2269_v60 }
0x128e   :  { %2783 = verf.f32 %v2280_v61 }
0x128f   :  { %2785 = verf.f32 %v2279_v0 }
0x1298   :  { %v2784_v62 = vpop.eup %2783 }
0x1299   :  { %v2786_v63 = vpop.eup %2785  ;;  %v2284_v2 = vadd.f32 1.0, %v2784_v62 }
0x129a   :  { %v2283_v4 = vadd.f32 1.0, %v2786_v63 }
0x129b   :  { %v2286_v7 = vmul.f32 %v2284_v2, %v2278_v5 }
0x129c   :  { %v2285_v6 = vmul.f32 %v2283_v4, %v2277_v3 }
0x129e   :  { %2679 = vmatprep.mubr.msk.f32.mxu0 %vm2302_vm4, %v2285_v6 }
0x129f   :  { %2680 = vmatmul.mubr.msk.f32.vlgmr.msra.gmra.mrb[12].mxu0 %vm2302_vm4, %v2286_v7 }
0x1372   :  { %v2681_v9 = vpop.f32.mrb[12].mxu0 }
0x1373   :  { %v2381_v10 = vadd.f32 %v2681_v9, %v2448_v8  ;;  %v2375_v11 = vpop.f32.mrb[13].mxu0 }
0x1374   :  { %v2376_v12 = vadd.f32 %v2448_v8, %v2375_v11 }
0x1375   :  { %v2385_v13 = vadd.f32 %v2381_v10, %v3196_v22 }
0x1376   :  { %v2384_v14 = vadd.f32 %v2376_v12, %v3170_v51 }
0x1377   :  { %2387 = vst.msk [vmem:[#allocation7 + $0x8] sm:$0xff] %vm63_vm0, %v2385_v13 }
0x1378   :  { %2386 = vst.msk [vmem:[#allocation7] sm:$0xff] %vm63_vm0, %v2384_v14 }
0x1379   :  { %2820 = shalt.err (!%p2817_p12)
}
0x137a   :  { %s2821_s0 = scalar_lea.hbm %s3279_s13, 256 }
0x137b   :  { %p2822_p13 = scmp.ne.s32.totalorder %s3279_s13, %s2821_s0  ;;  %p2825_p0 = scmp.lt.u32.totalorder %s2821_s0, %s3279_s13 }
0x137d   :  { %p2827_p1 = pnand %p2825_p0, %p2822_p13 }
0x137f   :  { %2830 = shalt.err (!%p2827_p1)
}
0x1380   :  { %2399 = dma.vmem_to_hbm [thread:$0]  %s2394_s17, 256, %s3279_s13, [#allocation6], %s2836_s18, %s2836_s18, %s2837_s19  }
0x1381   :  { %2833 = dma.done.wait [#allocation6], 256  }
0x1382   :  { %2834 = vsyncadd [#allocation6], 4294967040 }
0x1383   :  { %2403 = vsyncpa [#allocation5], 1 }
0x1384   :  { %2404 = vsyncpa [#allocation6], 1 }

</bundles_post_ra>
